<compile_context>
chip_gen: v6e
topology: v6e:2x2x1
jax: 0.10.0
libtpu: 0.0.40
codegen_flags: <defaults>
</compile_context>

<pallas_src>
import functools
import math

import jax
import jax.numpy as jnp
from jax.experimental import pallas as pl
from jax.experimental.pallas import tpu as pltpu

B = 2          # batch (number of prompts)
S = 8          # context length
D = 32         # transformer width
H = 4          # attention heads
HD = D // H    # head dim
L = 2          # transformer layers
E = 32         # text_projection output dim
FF = 4 * D     # MLP hidden dim
EPS = 1e-5     # LayerNorm eps (PyTorch default)
NEG = -1e9     # causal-mask fill (CLIP uses -inf; identical after softmax)
SCALE = 1.0 / math.sqrt(HD)


def _ln(x, g, b):
    """LayerNorm over the last axis (biased variance, matches PyTorch), f32."""
    mu = jnp.mean(x, axis=-1, keepdims=True)
    var = jnp.mean(jnp.square(x - mu), axis=-1, keepdims=True)
    return (x - mu) * jax.lax.rsqrt(var + EPS) * g + b


# ------------------------------ fused kernel --------------------------------

def _text_encoder_kernel(eot_ref,                                   # SMEM (B,)
                         prompts_ref, pos_ref,
                         ln1_g_ref, ln1_b_ref,
                         w_qkv_ref, b_qkv_ref,
                         w_out_ref, b_out_ref,
                         ln2_g_ref, ln2_b_ref,
                         w_fc_ref, b_fc_ref,
                         w_proj_ref, b_proj_ref,
                         lnf_g_ref, lnf_b_ref, tproj_ref,
                         o_ref,                                     # (1, 1, E)
                         x_scr):                                    # VMEM (S, D) f32
    b = pl.program_id(0)
    l = pl.program_id(1)

    # ---- embeddings at the first layer step of this batch row
    @pl.when(l == 0)
    def _():
        x_scr[...] = (prompts_ref[0].astype(jnp.float32)
                      + pos_ref[...].astype(jnp.float32))

    # ---- causal mask, built with iota compares (VPU only, no relayouts)
    row = jax.lax.broadcasted_iota(jnp.int32, (S, S), 0)
    col = jax.lax.broadcasted_iota(jnp.int32, (S, S), 1)
    mask = jnp.where(col <= row, 0.0, NEG).astype(jnp.float32)

    x = x_scr[...]                                                  # (S, D) f32

    # ---- attention sub-block: x = x + out_proj(attn(ln_1(x)))
    h = _ln(x, ln1_g_ref[0], ln1_b_ref[0])
    h16 = h.astype(jnp.bfloat16)
    # q/k/v from three clean matmuls (no lane slicing of a fused qkv);
    # 1/sqrt(HD) is already folded into the q weight/bias.
    q = (jnp.dot(h16, w_qkv_ref[0, 0], preferred_element_type=jnp.float32)
         + b_qkv_ref[0, 0])
    k = (jnp.dot(h16, w_qkv_ref[0, 1], preferred_element_type=jnp.float32)
         + b_qkv_ref[0, 1])
    v = (jnp.dot(h16, w_qkv_ref[0, 2], preferred_element_type=jnp.float32)
         + b_qkv_ref[0, 2])

    attn = jnp.zeros((S, D), jnp.float32)
    for hh in range(H):                                             # static head loop
        lo, hi = hh * HD, (hh + 1) * HD
        qh = q[:, lo:hi].astype(jnp.bfloat16)
        kh = k[:, lo:hi].astype(jnp.bfloat16)
        vh = v[:, lo:hi].astype(jnp.bfloat16)
        # scores = qh @ kh^T (contraction over HD), f32 accumulation
        s = jax.lax.dot_general(qh, kh, (((1,), (1,)), ((), ())),
                                preferred_element_type=jnp.float32)
        s = s + mask
        s = s - jnp.max(s, axis=-1, keepdims=True)
        p = jnp.exp(s)
        p = p * pl.reciprocal(jnp.sum(p, axis=-1, keepdims=True), approx=True)
        head = jnp.dot(p.astype(jnp.bfloat16), vh,
                       preferred_element_type=jnp.float32)          # (S, HD)
        # out_proj decomposed per head: no head concat along lanes
        attn = attn + jnp.dot(head.astype(jnp.bfloat16), w_out_ref[0, hh],
                              preferred_element_type=jnp.float32)
    x = x + attn + b_out_ref[0]

    # ---- MLP sub-block: x = x + c_proj(quick_gelu(c_fc(ln_2(x))))
    h = _ln(x, ln2_g_ref[0], ln2_b_ref[0])
    h = (jnp.dot(h.astype(jnp.bfloat16), w_fc_ref[0],
                 preferred_element_type=jnp.float32) + b_fc_ref[0])  # (S, FF)
    h = h * jax.nn.sigmoid(1.702 * h)                                # QuickGELU (f32)
    h = (jnp.dot(h.astype(jnp.bfloat16), w_proj_ref[0],
                 preferred_element_type=jnp.float32) + b_proj_ref[0])
    x = x + h
    x_scr[...] = x

    # ---- last layer: final LN, one-hot EOT pooling, text projection
    @pl.when(l == pl.num_programs(1) - 1)
    def _():
        y = _ln(x, lnf_g_ref[...], lnf_b_ref[...])                   # (S, D) f32
        eot = eot_ref[b]
        sel = jnp.where(
            jax.lax.broadcasted_iota(jnp.int32, (1, S), 1) == eot, 1.0, 0.0)
        pooled = jnp.dot(sel.astype(jnp.bfloat16), y.astype(jnp.bfloat16),
                         preferred_element_type=jnp.float32)         # (1, D)
        out = jnp.dot(pooled.astype(jnp.bfloat16), tproj_ref[...],
                      preferred_element_type=jnp.float32)            # (1, E)
        o_ref[0] = out.astype(o_ref.dtype)


# ------------------------------ call wrapper ---------------------------------

def text_encoder_forward(params, prompts, tokenized_prompts):
    # EOT index per prompt (standard CLIP: EOT token has the max id).
    eot = jnp.argmax(tokenized_prompts, axis=-1).astype(jnp.int32)   # (B,)

    inputs = (
        prompts, params["pos_emb"],
        params["ln1_g"], params["ln1_b"],
        params["w_qkv"], params["b_qkv"],
        params["w_out"], params["b_out"],
        params["ln2_g"], params["ln2_b"],
        params["w_fc"], params["b_fc"],
        params["w_proj"], params["b_proj"],
        params["lnf_g"], params["lnf_b"], params["text_projection"],
    )

    in_specs = [
        pl.BlockSpec((1, S, D), lambda b, l, eot: (b, 0, 0)),        # prompts
        pl.BlockSpec((S, D), lambda b, l, eot: (0, 0)),              # pos_emb
        pl.BlockSpec((1, 1, D), lambda b, l, eot: (l, 0, 0)),        # ln1_g
        pl.BlockSpec((1, 1, D), lambda b, l, eot: (l, 0, 0)),        # ln1_b
        pl.BlockSpec((1, 3, D, D), lambda b, l, eot: (l, 0, 0, 0)),  # w_qkv
        pl.BlockSpec((1, 3, 1, D), lambda b, l, eot: (l, 0, 0, 0)),  # b_qkv
        pl.BlockSpec((1, H, HD, D), lambda b, l, eot: (l, 0, 0, 0)), # w_out
        pl.BlockSpec((1, 1, D), lambda b, l, eot: (l, 0, 0)),        # b_out
        pl.BlockSpec((1, 1, D), lambda b, l, eot: (l, 0, 0)),        # ln2_g
        pl.BlockSpec((1, 1, D), lambda b, l, eot: (l, 0, 0)),        # ln2_b
        pl.BlockSpec((1, D, FF), lambda b, l, eot: (l, 0, 0)),       # w_fc
        pl.BlockSpec((1, 1, FF), lambda b, l, eot: (l, 0, 0)),       # b_fc
        pl.BlockSpec((1, FF, D), lambda b, l, eot: (l, 0, 0)),       # w_proj
        pl.BlockSpec((1, 1, D), lambda b, l, eot: (l, 0, 0)),        # b_proj
        pl.BlockSpec((1, D), lambda b, l, eot: (0, 0)),              # lnf_g
        pl.BlockSpec((1, D), lambda b, l, eot: (0, 0)),              # lnf_b
        pl.BlockSpec((D, E), lambda b, l, eot: (0, 0)),              # text_projection
    ]

    grid_spec = pltpu.PrefetchScalarGridSpec(
        num_scalar_prefetch=1,
        grid=(B, L),                                   # batch parallel, layers arbitrary
        in_specs=in_specs,
        out_specs=pl.BlockSpec((1, 1, E), lambda b, l, eot: (b, 0, 0)),
        scratch_shapes=[pltpu.VMEM((S, D), jnp.float32)],
    )
    out = pl.pallas_call(
        _text_encoder_kernel,
        grid_spec=grid_spec,
        out_shape=jax.ShapeDtypeStruct((B, 1, E), jnp.float32),
        compiler_params=pltpu.CompilerParams(
            dimension_semantics=("parallel", "arbitrary")),
    )(eot, *inputs)
    return out.reshape(B, E)


# ------------------------------- parameters ----------------------------------

def init_params(key):
    """Synthetic CLIP-style parameters in their natural (PyTorch-like) layout."""
    keys = iter(jax.random.split(key, 8))

    def nrm(k, shape, scale=0.02):
        return (scale * jax.random.normal(k, shape)).astype(jnp.float32)

    return {
        "pos_emb": nrm(next(keys), (S, D)),
        "text_projection": nrm(next(keys), (D, E), scale=D ** -0.5),
        "lnf_g": jnp.ones((D,), jnp.float32),
        "lnf_b": jnp.zeros((D,), jnp.float32),
        "ln1_g": jnp.ones((L, D), jnp.float32),
        "ln1_b": jnp.zeros((L, D), jnp.float32),
        "w_in": nrm(next(keys), (L, D, 3 * D)),
        "b_in": jnp.zeros((L, 3 * D), jnp.float32),
        "w_out": nrm(next(keys), (L, D, D)),
        "b_out": jnp.zeros((L, D), jnp.float32),
        "ln2_g": jnp.ones((L, D), jnp.float32),
        "ln2_b": jnp.zeros((L, D), jnp.float32),
        "w_fc": nrm(next(keys), (L, D, FF)),
        "b_fc": jnp.zeros((L, FF), jnp.float32),
        "w_proj": nrm(next(keys), (L, FF, D)),
        "b_proj": jnp.zeros((L, D), jnp.float32),
    }


def prepare_params(p):
    """One-time parameter prep: split qkv, fold SCALE (in f32, before bf16 cast),
    reshape per-head out_proj, make biases/LN params 2-D rows, cast matmul
    weights to bf16 (f32 accumulation happens in-kernel)."""
    w_qkv = p["w_in"].reshape(L, D, 3, D).transpose(0, 2, 1, 3)      # (L,3,D,D)
    b_qkv = p["b_in"].reshape(L, 3, 1, D)                            # (L,3,1,D)
    w_qkv = w_qkv.at[:, 0].multiply(SCALE)                           # fold 1/sqrt(HD)
    b_qkv = b_qkv.at[:, 0].multiply(SCALE)
    return {
        "pos_emb": p["pos_emb"],
        "text_projection": p["text_projection"].astype(jnp.bfloat16),
        "lnf_g": p["lnf_g"].reshape(1, D),
        "lnf_b": p["lnf_b"].reshape(1, D),
        "ln1_g": p["ln1_g"].reshape(L, 1, D),
        "ln1_b": p["ln1_b"].reshape(L, 1, D),
        "w_qkv": w_qkv.astype(jnp.bfloat16),
        "b_qkv": b_qkv,
        "w_out": p["w_out"].reshape(L, H, HD, D).astype(jnp.bfloat16),
        "b_out": p["b_out"].reshape(L, 1, D),
        "ln2_g": p["ln2_g"].reshape(L, 1, D),
        "ln2_b": p["ln2_b"].reshape(L, 1, D),
        "w_fc": p["w_fc"].astype(jnp.bfloat16),
        "b_fc": p["b_fc"].reshape(L, 1, FF),
        "w_proj": p["w_proj"].astype(jnp.bfloat16),
        "b_proj": p["b_proj"].reshape(L, 1, D),
    }


# ---------------------------------- main --------------------------------------

if __name__ == "__main__":
    key = jax.random.PRNGKey(0)
    kp, kprompt = jax.random.split(key)
    params = prepare_params(init_params(kp))

    prompts = 0.02 * jax.random.normal(kprompt, (B, S, D), jnp.float32)
    # tokenized prompts: SOS ... tokens ... EOT (EOT has the highest id -> argmax)
    tokenized = jnp.zeros((B, S), jnp.int32)
    tokenized = tokenized.at[:, 0].set(49406)
    tokenized = tokenized.at[0, 1:4].set(jnp.array([320, 1125, 539], jnp.int32))
    tokenized = tokenized.at[0, 4].set(49407)
    tokenized = tokenized.at[1, 1:6].set(
        jnp.array([320, 1125, 539, 1125, 320], jnp.int32))
    tokenized = tokenized.at[1, 6].set(49407)

    fwd = jax.jit(functools.partial(text_encoder_forward, params))
    out = jax.block_until_ready(fwd(prompts, tokenized))

    assert out.shape == (B, E), out.shape
    assert bool(jnp.all(jnp.isfinite(out)))
    print("KERNEL_OK")
</pallas_src>

<mosaic_0001>
module attributes {stable_mosaic.version = 11 : i64} {
  func.func @_text_encoder_kernel(%arg0: i32, %arg1: i32, %arg2: memref<2xi32, #tpu.memory_space<smem>>, %arg3: memref<1x8x32xf32, #tpu.memory_space<vmem>>, %arg4: memref<8x32xf32, #tpu.memory_space<vmem>>, %arg5: memref<1x1x32xf32, #tpu.memory_space<vmem>>, %arg6: memref<1x1x32xf32, #tpu.memory_space<vmem>>, %arg7: memref<1x3x32x32xbf16, #tpu.memory_space<vmem>>, %arg8: memref<1x3x1x32xf32, #tpu.memory_space<vmem>>, %arg9: memref<1x4x8x32xbf16, #tpu.memory_space<vmem>>, %arg10: memref<1x1x32xf32, #tpu.memory_space<vmem>>, %arg11: memref<1x1x32xf32, #tpu.memory_space<vmem>>, %arg12: memref<1x1x32xf32, #tpu.memory_space<vmem>>, %arg13: memref<1x32x128xbf16, #tpu.memory_space<vmem>>, %arg14: memref<1x1x128xf32, #tpu.memory_space<vmem>>, %arg15: memref<1x128x32xbf16, #tpu.memory_space<vmem>>, %arg16: memref<1x1x32xf32, #tpu.memory_space<vmem>>, %arg17: memref<1x32xf32, #tpu.memory_space<vmem>>, %arg18: memref<1x32xf32, #tpu.memory_space<vmem>>, %arg19: memref<32x32xbf16, #tpu.memory_space<vmem>>, %arg20: memref<1x1x32xf32, #tpu.memory_space<vmem>>, %arg21: memref<8x32xf32, #tpu.memory_space<vmem>>) attributes {dimension_semantics = [#tpu.dimension_semantics<parallel>, #tpu.dimension_semantics<arbitrary>], iteration_bounds = array<i64: 2, 2>, scalar_prefetch = 1 : i64, scratch_operands = 1 : i64, tpu.core_type = #tpu.core_type<tc>, window_params = [{transform_indices = @transform_0, window_bounds = array<i64: 1, 8, 32>}, {pipeline_mode = #tpu.pipeline_mode<synchronous>, transform_indices = @transform_1, window_bounds = array<i64: 8, 32>}, {transform_indices = @transform_2, window_bounds = array<i64: 1, 1, 32>}, {transform_indices = @transform_3, window_bounds = array<i64: 1, 1, 32>}, {transform_indices = @transform_4, window_bounds = array<i64: 1, 3, 32, 32>}, {transform_indices = @transform_5, window_bounds = array<i64: 1, 3, 1, 32>}, {transform_indices = @transform_6, window_bounds = array<i64: 1, 4, 8, 32>}, {transform_indices = @transform_7, window_bounds = array<i64: 1, 1, 32>}, {transform_indices = @transform_8, window_bounds = array<i64: 1, 1, 32>}, {transform_indices = @transform_9, window_bounds = array<i64: 1, 1, 32>}, {transform_indices = @transform_10, window_bounds = array<i64: 1, 32, 128>}, {transform_indices = @transform_11, window_bounds = array<i64: 1, 1, 128>}, {transform_indices = @transform_12, window_bounds = array<i64: 1, 128, 32>}, {transform_indices = @transform_13, window_bounds = array<i64: 1, 1, 32>}, {pipeline_mode = #tpu.pipeline_mode<synchronous>, transform_indices = @transform_14, window_bounds = array<i64: 1, 32>}, {pipeline_mode = #tpu.pipeline_mode<synchronous>, transform_indices = @transform_15, window_bounds = array<i64: 1, 32>}, {pipeline_mode = #tpu.pipeline_mode<synchronous>, transform_indices = @transform_16, window_bounds = array<i64: 32, 32>}, {transform_indices = @transform_17, window_bounds = array<i64: 1, 1, 32>}]} {
    %c0_i32 = arith.constant 0 : i32
    %0 = arith.cmpi eq, %arg1, %c0_i32 : i32
    %1 = arith.extui %0 : i1 to i32
    %c0_i32_0 = arith.constant 0 : i32
    %2 = arith.cmpi ne, %1, %c0_i32_0 : i32
    scf.if %2 {
      %c0_108 = arith.constant 0 : index
      %c0_109 = arith.constant 0 : index
      %c0_110 = arith.constant 0 : index
      %219 = vector.load %arg3[%c0_108, %c0_109, %c0_110] : memref<1x8x32xf32, #tpu.memory_space<vmem>>, vector<1x8x32xf32>
      %220 = vector.shape_cast %219 : vector<1x8x32xf32> to vector<8x32xf32>
      %c0_111 = arith.constant 0 : index
      %c0_112 = arith.constant 0 : index
      %221 = vector.load %arg4[%c0_111, %c0_112] : memref<8x32xf32, #tpu.memory_space<vmem>>, vector<8x32xf32>
      %222 = arith.addf %220, %221 : vector<8x32xf32>
      %c0_113 = arith.constant 0 : index
      %c0_114 = arith.constant 0 : index
      %223 = vector.load %arg21[%c0_113, %c0_114] : memref<8x32xf32, #tpu.memory_space<vmem>>, vector<8x32xf32>
      tpu.vector_store %arg21[%c0_113, %c0_114], %222 {strides = array<i32>} : memref<8x32xf32, #tpu.memory_space<vmem>>, vector<8x32xf32>,
    } else {
    }
    %3 = tpu.iota {dimensions = array<i32: 0>} : vector<8x8xi32>
    %4 = tpu.iota {dimensions = array<i32: 1>} : vector<8x8xi32>
    %5 = arith.cmpi sle, %4, %3 : vector<8x8xi32>
    %cst = arith.constant 0.000000e+00 : f32
    %cst_1 = arith.constant -1.000000e+09 : f32
    %6 = vector.broadcast %cst : f32 to vector<8x8xf32>
    %7 = vector.broadcast %cst_1 : f32 to vector<8x8xf32>
    %8 = arith.select %5, %6, %7 : vector<8x8xi1>, vector<8x8xf32>
    %c0 = arith.constant 0 : index
    %c0_2 = arith.constant 0 : index
    %9 = vector.load %arg21[%c0, %c0_2] : memref<8x32xf32, #tpu.memory_space<vmem>>, vector<8x32xf32>
    %c0_3 = arith.constant 0 : index
    %c0_4 = arith.constant 0 : index
    %c0_5 = arith.constant 0 : index
    %10 = vector.load %arg5[%c0_3, %c0_4, %c0_5] : memref<1x1x32xf32, #tpu.memory_space<vmem>>, vector<1x1x32xf32>
    %11 = vector.shape_cast %10 : vector<1x1x32xf32> to vector<1x32xf32>
    %c0_6 = arith.constant 0 : index
    %c0_7 = arith.constant 0 : index
    %c0_8 = arith.constant 0 : index
    %12 = vector.load %arg6[%c0_6, %c0_7, %c0_8] : memref<1x1x32xf32, #tpu.memory_space<vmem>>, vector<1x1x32xf32>
    %13 = vector.shape_cast %12 : vector<1x1x32xf32> to vector<1x32xf32>
    %cst_9 = arith.constant dense<0.000000e+00> : vector<8xf32>
    %14 = vector.multi_reduction <add>, %9, %cst_9 [1] : vector<8x32xf32> to vector<8xf32>
    %15 = vector.shape_cast %14 : vector<8xf32> to vector<8x1xf32>
    %cst_10 = arith.constant 3.200000e+01 : f32
    %16 = vector.broadcast %cst_10 : f32 to vector<8x1xf32>
    %17 = arith.divf %15, %16 : vector<8x1xf32>
    %18 = vector.broadcast %17 : vector<8x1xf32> to vector<8x32xf32>
    %19 = arith.subf %9, %18 : vector<8x32xf32>
    %20 = arith.mulf %19, %19 : vector<8x32xf32>
    %cst_11 = arith.constant dense<0.000000e+00> : vector<8xf32>
    %21 = vector.multi_reduction <add>, %20, %cst_11 [1] : vector<8x32xf32> to vector<8xf32>
    %22 = vector.shape_cast %21 : vector<8xf32> to vector<8x1xf32>
    %cst_12 = arith.constant 3.200000e+01 : f32
    %23 = vector.broadcast %cst_12 : f32 to vector<8x1xf32>
    %24 = arith.divf %22, %23 : vector<8x1xf32>
    %25 = vector.broadcast %17 : vector<8x1xf32> to vector<8x32xf32>
    %26 = arith.subf %9, %25 : vector<8x32xf32>
    %cst_13 = arith.constant 9.99999974E-6 : f32
    %27 = vector.broadcast %cst_13 : f32 to vector<8x1xf32>
    %28 = arith.addf %24, %27 : vector<8x1xf32>
    %29 = math.rsqrt %28 : vector<8x1xf32>
    %30 = vector.broadcast %29 : vector<8x1xf32> to vector<8x32xf32>
    %31 = arith.mulf %26, %30 : vector<8x32xf32>
    %32 = vector.broadcast %11 : vector<1x32xf32> to vector<8x32xf32>
    %33 = arith.mulf %31, %32 : vector<8x32xf32>
    %34 = vector.broadcast %13 : vector<1x32xf32> to vector<8x32xf32>
    %35 = arith.addf %33, %34 : vector<8x32xf32>
    %36 = arith.truncf %35 : vector<8x32xf32> to vector<8x32xbf16>
    %c0_14 = arith.constant 0 : index
    %c0_15 = arith.constant 0 : index
    %c0_16 = arith.constant 0 : index
    %c0_17 = arith.constant 0 : index
    %37 = vector.load %arg7[%c0_14, %c0_15, %c0_16, %c0_17] : memref<1x3x32x32xbf16, #tpu.memory_space<vmem>>, vector<1x1x32x32xbf16>
    %38 = vector.shape_cast %37 : vector<1x1x32x32xbf16> to vector<32x32xbf16>
    %cst_18 = arith.constant dense<0.000000e+00> : vector<8x32xf32>
    %39 = tpu.matmul %36, %38, %cst_18 {dimension_numbers = #tpu.dot_dimension_numbers<[1], [0], [0], [1], [0, 0, 1, 1], [], []>} : vector<8x32xbf16>, vector<32x32xbf16>, vector<8x32xf32> -> vector<8x32xf32>
    %c0_19 = arith.constant 0 : index
    %c0_20 = arith.constant 0 : index
    %c0_21 = arith.constant 0 : index
    %c0_22 = arith.constant 0 : index
    %40 = vector.load %arg8[%c0_19, %c0_20, %c0_21, %c0_22] : memref<1x3x1x32xf32, #tpu.memory_space<vmem>>, vector<1x1x1x32xf32>
    %41 = vector.shape_cast %40 : vector<1x1x1x32xf32> to vector<1x32xf32>
    %42 = vector.broadcast %41 : vector<1x32xf32> to vector<8x32xf32>
    %43 = arith.addf %39, %42 : vector<8x32xf32>
    %c0_23 = arith.constant 0 : index
    %c1 = arith.constant 1 : index
    %c0_24 = arith.constant 0 : index
    %c0_25 = arith.constant 0 : index
    %44 = vector.load %arg7[%c0_23, %c1, %c0_24, %c0_25] : memref<1x3x32x32xbf16, #tpu.memory_space<vmem>>, vector<1x1x32x32xbf16>
    %45 = vector.shape_cast %44 : vector<1x1x32x32xbf16> to vector<32x32xbf16>
    %cst_26 = arith.constant dense<0.000000e+00> : vector<8x32xf32>
    %46 = tpu.matmul %36, %45, %cst_26 {dimension_numbers = #tpu.dot_dimension_numbers<[1], [0], [0], [1], [0, 0, 1, 1], [], []>} : vector<8x32xbf16>, vector<32x32xbf16>, vector<8x32xf32> -> vector<8x32xf32>
    %c0_27 = arith.constant 0 : index
    %c1_28 = arith.constant 1 : index
    %c0_29 = arith.constant 0 : index
    %c0_30 = arith.constant 0 : index
    %47 = vector.load %arg8[%c0_27, %c1_28, %c0_29, %c0_30] : memref<1x3x1x32xf32, #tpu.memory_space<vmem>>, vector<1x1x1x32xf32>
    %48 = vector.shape_cast %47 : vector<1x1x1x32xf32> to vector<1x32xf32>
    %49 = vector.broadcast %48 : vector<1x32xf32> to vector<8x32xf32>
    %50 = arith.addf %46, %49 : vector<8x32xf32>
    %c0_31 = arith.constant 0 : index
    %c2 = arith.constant 2 : index
    %c0_32 = arith.constant 0 : index
    %c0_33 = arith.constant 0 : index
    %51 = vector.load %arg7[%c0_31, %c2, %c0_32, %c0_33] : memref<1x3x32x32xbf16, #tpu.memory_space<vmem>>, vector<1x1x32x32xbf16>
    %52 = vector.shape_cast %51 : vector<1x1x32x32xbf16> to vector<32x32xbf16>
    %cst_34 = arith.constant dense<0.000000e+00> : vector<8x32xf32>
    %53 = tpu.matmul %36, %52, %cst_34 {dimension_numbers = #tpu.dot_dimension_numbers<[1], [0], [0], [1], [0, 0, 1, 1], [], []>} : vector<8x32xbf16>, vector<32x32xbf16>, vector<8x32xf32> -> vector<8x32xf32>
    %c0_35 = arith.constant 0 : index
    %c2_36 = arith.constant 2 : index
    %c0_37 = arith.constant 0 : index
    %c0_38 = arith.constant 0 : index
    %54 = vector.load %arg8[%c0_35, %c2_36, %c0_37, %c0_38] : memref<1x3x1x32xf32, #tpu.memory_space<vmem>>, vector<1x1x1x32xf32>
    %55 = vector.shape_cast %54 : vector<1x1x1x32xf32> to vector<1x32xf32>
    %56 = vector.broadcast %55 : vector<1x32xf32> to vector<8x32xf32>
    %57 = arith.addf %53, %56 : vector<8x32xf32>
    %cst_39 = arith.constant 0.000000e+00 : f32
    %58 = vector.broadcast %cst_39 : f32 to vector<8x32xf32>
    %59 = vector.extract_strided_slice %43 {offsets = [0, 0], sizes = [8, 8], strides = [1, 1]} : vector<8x32xf32> to vector<8x8xf32>
    %60 = arith.truncf %59 : vector<8x8xf32> to vector<8x8xbf16>
    %61 = vector.extract_strided_slice %50 {offsets = [0, 0], sizes = [8, 8], strides = [1, 1]} : vector<8x32xf32> to vector<8x8xf32>
    %62 = arith.truncf %61 : vector<8x8xf32> to vector<8x8xbf16>
    %63 = vector.extract_strided_slice %57 {offsets = [0, 0], sizes = [8, 8], strides = [1, 1]} : vector<8x32xf32> to vector<8x8xf32>
    %64 = arith.truncf %63 : vector<8x8xf32> to vector<8x8xbf16>
    %cst_40 = arith.constant dense<0.000000e+00> : vector<8x8xf32>
    %65 = tpu.matmul %60, %62, %cst_40 {dimension_numbers = #tpu.dot_dimension_numbers<[1], [1], [0], [0], [0, 0, 1, 0], [], []>} : vector<8x8xbf16>, vector<8x8xbf16>, vector<8x8xf32> -> vector<8x8xf32>
    %66 = arith.addf %65, %8 : vector<8x8xf32>
    %cst_41 = arith.constant dense<0xFF800000> : vector<8xf32>
    %67 = vector.multi_reduction <maximumf>, %66, %cst_41 [1] : vector<8x8xf32> to vector<8xf32>
    %68 = vector.shape_cast %67 : vector<8xf32> to vector<8x1xf32>
    %69 = vector.broadcast %68 : vector<8x1xf32> to vector<8x8xf32>
    %70 = arith.subf %66, %69 : vector<8x8xf32>
    %71 = math.exp %70 : vector<8x8xf32>
    %cst_42 = arith.constant dense<0.000000e+00> : vector<8xf32>
    %72 = vector.multi_reduction <add>, %71, %cst_42 [1] : vector<8x8xf32> to vector<8xf32>
    %73 = vector.shape_cast %72 : vector<8xf32> to vector<8x1xf32>
    %74 = tpu.reciprocal %73 {approx = true} : vector<8x1xf32> -> vector<8x1xf32>
    %75 = vector.broadcast %74 : vector<8x1xf32> to vector<8x8xf32>
    %76 = arith.mulf %71, %75 : vector<8x8xf32>
    %77 = arith.truncf %76 : vector<8x8xf32> to vector<8x8xbf16>
    %cst_43 = arith.constant dense<0.000000e+00> : vector<8x8xf32>
    %78 = tpu.matmul %77, %64, %cst_43 {dimension_numbers = #tpu.dot_dimension_numbers<[1], [0], [0], [1], [0, 0, 1, 1], [], []>} : vector<8x8xbf16>, vector<8x8xbf16>, vector<8x8xf32> -> vector<8x8xf32>
    %79 = arith.truncf %78 : vector<8x8xf32> to vector<8x8xbf16>
    %c0_44 = arith.constant 0 : index
    %c0_45 = arith.constant 0 : index
    %c0_46 = arith.constant 0 : index
    %c0_47 = arith.constant 0 : index
    %80 = vector.load %arg9[%c0_44, %c0_45, %c0_46, %c0_47] : memref<1x4x8x32xbf16, #tpu.memory_space<vmem>>, vector<1x1x8x32xbf16>
    %81 = vector.shape_cast %80 : vector<1x1x8x32xbf16> to vector<8x32xbf16>
    %cst_48 = arith.constant dense<0.000000e+00> : vector<8x32xf32>
    %82 = tpu.matmul %79, %81, %cst_48 {dimension_numbers = #tpu.dot_dimension_numbers<[1], [0], [0], [1], [0, 0, 1, 1], [], []>} : vector<8x8xbf16>, vector<8x32xbf16>, vector<8x32xf32> -> vector<8x32xf32>
    %83 = arith.addf %58, %82 : vector<8x32xf32>
    %84 = vector.extract_strided_slice %43 {offsets = [0, 8], sizes = [8, 8], strides = [1, 1]} : vector<8x32xf32> to vector<8x8xf32>
    %85 = arith.truncf %84 : vector<8x8xf32> to vector<8x8xbf16>
    %86 = vector.extract_strided_slice %50 {offsets = [0, 8], sizes = [8, 8], strides = [1, 1]} : vector<8x32xf32> to vector<8x8xf32>
    %87 = arith.truncf %86 : vector<8x8xf32> to vector<8x8xbf16>
    %88 = vector.extract_strided_slice %57 {offsets = [0, 8], sizes = [8, 8], strides = [1, 1]} : vector<8x32xf32> to vector<8x8xf32>
    %89 = arith.truncf %88 : vector<8x8xf32> to vector<8x8xbf16>
    %cst_49 = arith.constant dense<0.000000e+00> : vector<8x8xf32>
    %90 = tpu.matmul %85, %87, %cst_49 {dimension_numbers = #tpu.dot_dimension_numbers<[1], [1], [0], [0], [0, 0, 1, 0], [], []>} : vector<8x8xbf16>, vector<8x8xbf16>, vector<8x8xf32> -> vector<8x8xf32>
    %91 = arith.addf %90, %8 : vector<8x8xf32>
    %cst_50 = arith.constant dense<0xFF800000> : vector<8xf32>
    %92 = vector.multi_reduction <maximumf>, %91, %cst_50 [1] : vector<8x8xf32> to vector<8xf32>
    %93 = vector.shape_cast %92 : vector<8xf32> to vector<8x1xf32>
    %94 = vector.broadcast %93 : vector<8x1xf32> to vector<8x8xf32>
    %95 = arith.subf %91, %94 : vector<8x8xf32>
    %96 = math.exp %95 : vector<8x8xf32>
    %cst_51 = arith.constant dense<0.000000e+00> : vector<8xf32>
    %97 = vector.multi_reduction <add>, %96, %cst_51 [1] : vector<8x8xf32> to vector<8xf32>
    %98 = vector.shape_cast %97 : vector<8xf32> to vector<8x1xf32>
    %99 = tpu.reciprocal %98 {approx = true} : vector<8x1xf32> -> vector<8x1xf32>
    %100 = vector.broadcast %99 : vector<8x1xf32> to vector<8x8xf32>
    %101 = arith.mulf %96, %100 : vector<8x8xf32>
    %102 = arith.truncf %101 : vector<8x8xf32> to vector<8x8xbf16>
    %cst_52 = arith.constant dense<0.000000e+00> : vector<8x8xf32>
    %103 = tpu.matmul %102, %89, %cst_52 {dimension_numbers = #tpu.dot_dimension_numbers<[1], [0], [0], [1], [0, 0, 1, 1], [], []>} : vector<8x8xbf16>, vector<8x8xbf16>, vector<8x8xf32> -> vector<8x8xf32>
    %104 = arith.truncf %103 : vector<8x8xf32> to vector<8x8xbf16>
    %c0_53 = arith.constant 0 : index
    %c1_54 = arith.constant 1 : index
    %c0_55 = arith.constant 0 : index
    %c0_56 = arith.constant 0 : index
    %105 = vector.load %arg9[%c0_53, %c1_54, %c0_55, %c0_56] : memref<1x4x8x32xbf16, #tpu.memory_space<vmem>>, vector<1x1x8x32xbf16>
    %106 = vector.shape_cast %105 : vector<1x1x8x32xbf16> to vector<8x32xbf16>
    %cst_57 = arith.constant dense<0.000000e+00> : vector<8x32xf32>
    %107 = tpu.matmul %104, %106, %cst_57 {dimension_numbers = #tpu.dot_dimension_numbers<[1], [0], [0], [1], [0, 0, 1, 1], [], []>} : vector<8x8xbf16>, vector<8x32xbf16>, vector<8x32xf32> -> vector<8x32xf32>
    %108 = arith.addf %83, %107 : vector<8x32xf32>
    %109 = vector.extract_strided_slice %43 {offsets = [0, 16], sizes = [8, 8], strides = [1, 1]} : vector<8x32xf32> to vector<8x8xf32>
    %110 = arith.truncf %109 : vector<8x8xf32> to vector<8x8xbf16>
    %111 = vector.extract_strided_slice %50 {offsets = [0, 16], sizes = [8, 8], strides = [1, 1]} : vector<8x32xf32> to vector<8x8xf32>
    %112 = arith.truncf %111 : vector<8x8xf32> to vector<8x8xbf16>
    %113 = vector.extract_strided_slice %57 {offsets = [0, 16], sizes = [8, 8], strides = [1, 1]} : vector<8x32xf32> to vector<8x8xf32>
    %114 = arith.truncf %113 : vector<8x8xf32> to vector<8x8xbf16>
    %cst_58 = arith.constant dense<0.000000e+00> : vector<8x8xf32>
    %115 = tpu.matmul %110, %112, %cst_58 {dimension_numbers = #tpu.dot_dimension_numbers<[1], [1], [0], [0], [0, 0, 1, 0], [], []>} : vector<8x8xbf16>, vector<8x8xbf16>, vector<8x8xf32> -> vector<8x8xf32>
    %116 = arith.addf %115, %8 : vector<8x8xf32>
    %cst_59 = arith.constant dense<0xFF800000> : vector<8xf32>
    %117 = vector.multi_reduction <maximumf>, %116, %cst_59 [1] : vector<8x8xf32> to vector<8xf32>
    %118 = vector.shape_cast %117 : vector<8xf32> to vector<8x1xf32>
    %119 = vector.broadcast %118 : vector<8x1xf32> to vector<8x8xf32>
    %120 = arith.subf %116, %119 : vector<8x8xf32>
    %121 = math.exp %120 : vector<8x8xf32>
    %cst_60 = arith.constant dense<0.000000e+00> : vector<8xf32>
    %122 = vector.multi_reduction <add>, %121, %cst_60 [1] : vector<8x8xf32> to vector<8xf32>
    %123 = vector.shape_cast %122 : vector<8xf32> to vector<8x1xf32>
    %124 = tpu.reciprocal %123 {approx = true} : vector<8x1xf32> -> vector<8x1xf32>
    %125 = vector.broadcast %124 : vector<8x1xf32> to vector<8x8xf32>
    %126 = arith.mulf %121, %125 : vector<8x8xf32>
    %127 = arith.truncf %126 : vector<8x8xf32> to vector<8x8xbf16>
    %cst_61 = arith.constant dense<0.000000e+00> : vector<8x8xf32>
    %128 = tpu.matmul %127, %114, %cst_61 {dimension_numbers = #tpu.dot_dimension_numbers<[1], [0], [0], [1], [0, 0, 1, 1], [], []>} : vector<8x8xbf16>, vector<8x8xbf16>, vector<8x8xf32> -> vector<8x8xf32>
    %129 = arith.truncf %128 : vector<8x8xf32> to vector<8x8xbf16>
    %c0_62 = arith.constant 0 : index
    %c2_63 = arith.constant 2 : index
    %c0_64 = arith.constant 0 : index
    %c0_65 = arith.constant 0 : index
    %130 = vector.load %arg9[%c0_62, %c2_63, %c0_64, %c0_65] : memref<1x4x8x32xbf16, #tpu.memory_space<vmem>>, vector<1x1x8x32xbf16>
    %131 = vector.shape_cast %130 : vector<1x1x8x32xbf16> to vector<8x32xbf16>
    %cst_66 = arith.constant dense<0.000000e+00> : vector<8x32xf32>
    %132 = tpu.matmul %129, %131, %cst_66 {dimension_numbers = #tpu.dot_dimension_numbers<[1], [0], [0], [1], [0, 0, 1, 1], [], []>} : vector<8x8xbf16>, vector<8x32xbf16>, vector<8x32xf32> -> vector<8x32xf32>
    %133 = arith.addf %108, %132 : vector<8x32xf32>
    %134 = vector.extract_strided_slice %43 {offsets = [0, 24], sizes = [8, 8], strides = [1, 1]} : vector<8x32xf32> to vector<8x8xf32>
    %135 = arith.truncf %134 : vector<8x8xf32> to vector<8x8xbf16>
    %136 = vector.extract_strided_slice %50 {offsets = [0, 24], sizes = [8, 8], strides = [1, 1]} : vector<8x32xf32> to vector<8x8xf32>
    %137 = arith.truncf %136 : vector<8x8xf32> to vector<8x8xbf16>
    %138 = vector.extract_strided_slice %57 {offsets = [0, 24], sizes = [8, 8], strides = [1, 1]} : vector<8x32xf32> to vector<8x8xf32>
    %139 = arith.truncf %138 : vector<8x8xf32> to vector<8x8xbf16>
    %cst_67 = arith.constant dense<0.000000e+00> : vector<8x8xf32>
    %140 = tpu.matmul %135, %137, %cst_67 {dimension_numbers = #tpu.dot_dimension_numbers<[1], [1], [0], [0], [0, 0, 1, 0], [], []>} : vector<8x8xbf16>, vector<8x8xbf16>, vector<8x8xf32> -> vector<8x8xf32>
    %141 = arith.addf %140, %8 : vector<8x8xf32>
    %cst_68 = arith.constant dense<0xFF800000> : vector<8xf32>
    %142 = vector.multi_reduction <maximumf>, %141, %cst_68 [1] : vector<8x8xf32> to vector<8xf32>
    %143 = vector.shape_cast %142 : vector<8xf32> to vector<8x1xf32>
    %144 = vector.broadcast %143 : vector<8x1xf32> to vector<8x8xf32>
    %145 = arith.subf %141, %144 : vector<8x8xf32>
    %146 = math.exp %145 : vector<8x8xf32>
    %cst_69 = arith.constant dense<0.000000e+00> : vector<8xf32>
    %147 = vector.multi_reduction <add>, %146, %cst_69 [1] : vector<8x8xf32> to vector<8xf32>
    %148 = vector.shape_cast %147 : vector<8xf32> to vector<8x1xf32>
    %149 = tpu.reciprocal %148 {approx = true} : vector<8x1xf32> -> vector<8x1xf32>
    %150 = vector.broadcast %149 : vector<8x1xf32> to vector<8x8xf32>
    %151 = arith.mulf %146, %150 : vector<8x8xf32>
    %152 = arith.truncf %151 : vector<8x8xf32> to vector<8x8xbf16>
    %cst_70 = arith.constant dense<0.000000e+00> : vector<8x8xf32>
    %153 = tpu.matmul %152, %139, %cst_70 {dimension_numbers = #tpu.dot_dimension_numbers<[1], [0], [0], [1], [0, 0, 1, 1], [], []>} : vector<8x8xbf16>, vector<8x8xbf16>, vector<8x8xf32> -> vector<8x8xf32>
    %154 = arith.truncf %153 : vector<8x8xf32> to vector<8x8xbf16>
    %c0_71 = arith.constant 0 : index
    %c3 = arith.constant 3 : index
    %c0_72 = arith.constant 0 : index
    %c0_73 = arith.constant 0 : index
    %155 = vector.load %arg9[%c0_71, %c3, %c0_72, %c0_73] : memref<1x4x8x32xbf16, #tpu.memory_space<vmem>>, vector<1x1x8x32xbf16>
    %156 = vector.shape_cast %155 : vector<1x1x8x32xbf16> to vector<8x32xbf16>
    %cst_74 = arith.constant dense<0.000000e+00> : vector<8x32xf32>
    %157 = tpu.matmul %154, %156, %cst_74 {dimension_numbers = #tpu.dot_dimension_numbers<[1], [0], [0], [1], [0, 0, 1, 1], [], []>} : vector<8x8xbf16>, vector<8x32xbf16>, vector<8x32xf32> -> vector<8x32xf32>
    %158 = arith.addf %133, %157 : vector<8x32xf32>
    %159 = arith.addf %9, %158 : vector<8x32xf32>
    %c0_75 = arith.constant 0 : index
    %c0_76 = arith.constant 0 : index
    %c0_77 = arith.constant 0 : index
    %160 = vector.load %arg10[%c0_75, %c0_76, %c0_77] : memref<1x1x32xf32, #tpu.memory_space<vmem>>, vector<1x1x32xf32>
    %161 = vector.shape_cast %160 : vector<1x1x32xf32> to vector<1x32xf32>
    %162 = vector.broadcast %161 : vector<1x32xf32> to vector<8x32xf32>
    %163 = arith.addf %159, %162 : vector<8x32xf32>
    %c0_78 = arith.constant 0 : index
    %c0_79 = arith.constant 0 : index
    %c0_80 = arith.constant 0 : index
    %164 = vector.load %arg11[%c0_78, %c0_79, %c0_80] : memref<1x1x32xf32, #tpu.memory_space<vmem>>, vector<1x1x32xf32>
    %165 = vector.shape_cast %164 : vector<1x1x32xf32> to vector<1x32xf32>
    %c0_81 = arith.constant 0 : index
    %c0_82 = arith.constant 0 : index
    %c0_83 = arith.constant 0 : index
    %166 = vector.load %arg12[%c0_81, %c0_82, %c0_83] : memref<1x1x32xf32, #tpu.memory_space<vmem>>, vector<1x1x32xf32>
    %167 = vector.shape_cast %166 : vector<1x1x32xf32> to vector<1x32xf32>
    %cst_84 = arith.constant dense<0.000000e+00> : vector<8xf32>
    %168 = vector.multi_reduction <add>, %163, %cst_84 [1] : vector<8x32xf32> to vector<8xf32>
    %169 = vector.shape_cast %168 : vector<8xf32> to vector<8x1xf32>
    %cst_85 = arith.constant 3.200000e+01 : f32
    %170 = vector.broadcast %cst_85 : f32 to vector<8x1xf32>
    %171 = arith.divf %169, %170 : vector<8x1xf32>
    %172 = vector.broadcast %171 : vector<8x1xf32> to vector<8x32xf32>
    %173 = arith.subf %163, %172 : vector<8x32xf32>
    %174 = arith.mulf %173, %173 : vector<8x32xf32>
    %cst_86 = arith.constant dense<0.000000e+00> : vector<8xf32>
    %175 = vector.multi_reduction <add>, %174, %cst_86 [1] : vector<8x32xf32> to vector<8xf32>
    %176 = vector.shape_cast %175 : vector<8xf32> to vector<8x1xf32>
    %cst_87 = arith.constant 3.200000e+01 : f32
    %177 = vector.broadcast %cst_87 : f32 to vector<8x1xf32>
    %178 = arith.divf %176, %177 : vector<8x1xf32>
    %179 = vector.broadcast %171 : vector<8x1xf32> to vector<8x32xf32>
    %180 = arith.subf %163, %179 : vector<8x32xf32>
    %cst_88 = arith.constant 9.99999974E-6 : f32
    %181 = vector.broadcast %cst_88 : f32 to vector<8x1xf32>
    %182 = arith.addf %178, %181 : vector<8x1xf32>
    %183 = math.rsqrt %182 : vector<8x1xf32>
    %184 = vector.broadcast %183 : vector<8x1xf32> to vector<8x32xf32>
    %185 = arith.mulf %180, %184 : vector<8x32xf32>
    %186 = vector.broadcast %165 : vector<1x32xf32> to vector<8x32xf32>
    %187 = arith.mulf %185, %186 : vector<8x32xf32>
    %188 = vector.broadcast %167 : vector<1x32xf32> to vector<8x32xf32>
    %189 = arith.addf %187, %188 : vector<8x32xf32>
    %190 = arith.truncf %189 : vector<8x32xf32> to vector<8x32xbf16>
    %c0_89 = arith.constant 0 : index
    %c0_90 = arith.constant 0 : index
    %c0_91 = arith.constant 0 : index
    %191 = vector.load %arg13[%c0_89, %c0_90, %c0_91] : memref<1x32x128xbf16, #tpu.memory_space<vmem>>, vector<1x32x128xbf16>
    %192 = vector.shape_cast %191 : vector<1x32x128xbf16> to vector<32x128xbf16>
    %cst_92 = arith.constant dense<0.000000e+00> : vector<8x128xf32>
    %193 = tpu.matmul %190, %192, %cst_92 {dimension_numbers = #tpu.dot_dimension_numbers<[1], [0], [0], [1], [0, 0, 1, 1], [], []>} : vector<8x32xbf16>, vector<32x128xbf16>, vector<8x128xf32> -> vector<8x128xf32>
    %c0_93 = arith.constant 0 : index
    %c0_94 = arith.constant 0 : index
    %c0_95 = arith.constant 0 : index
    %194 = vector.load %arg14[%c0_93, %c0_94, %c0_95] : memref<1x1x128xf32, #tpu.memory_space<vmem>>, vector<1x1x128xf32>
    %195 = vector.shape_cast %194 : vector<1x1x128xf32> to vector<1x128xf32>
    %196 = vector.broadcast %195 : vector<1x128xf32> to vector<8x128xf32>
    %197 = arith.addf %193, %196 : vector<8x128xf32>
    %cst_96 = arith.constant 1.702000e+00 : f32
    %198 = vector.broadcast %cst_96 : f32 to vector<8x128xf32>
    %199 = arith.mulf %198, %197 : vector<8x128xf32>
    %200 = arith.negf %199 : vector<8x128xf32>
    %201 = math.exp %200 : vector<8x128xf32>
    %cst_97 = arith.constant 1.000000e+00 : f32
    %202 = vector.broadcast %cst_97 : f32 to vector<8x128xf32>
    %203 = arith.addf %202, %201 : vector<8x128xf32>
    %204 = arith.divf %202, %203 : vector<8x128xf32>
    %205 = arith.mulf %197, %204 : vector<8x128xf32>
    %206 = arith.truncf %205 : vector<8x128xf32> to vector<8x128xbf16>
    %c0_98 = arith.constant 0 : index
    %c0_99 = arith.constant 0 : index
    %c0_100 = arith.constant 0 : index
    %207 = vector.load %arg15[%c0_98, %c0_99, %c0_100] : memref<1x128x32xbf16, #tpu.memory_space<vmem>>, vector<1x128x32xbf16>
    %208 = vector.shape_cast %207 : vector<1x128x32xbf16> to vector<128x32xbf16>
    %cst_101 = arith.constant dense<0.000000e+00> : vector<8x32xf32>
    %209 = tpu.matmul %206, %208, %cst_101 {dimension_numbers = #tpu.dot_dimension_numbers<[1], [0], [0], [1], [0, 0, 1, 1], [], []>} : vector<8x128xbf16>, vector<128x32xbf16>, vector<8x32xf32> -> vector<8x32xf32>
    %c0_102 = arith.constant 0 : index
    %c0_103 = arith.constant 0 : index
    %c0_104 = arith.constant 0 : index
    %210 = vector.load %arg16[%c0_102, %c0_103, %c0_104] : memref<1x1x32xf32, #tpu.memory_space<vmem>>, vector<1x1x32xf32>
    %211 = vector.shape_cast %210 : vector<1x1x32xf32> to vector<1x32xf32>
    %212 = vector.broadcast %211 : vector<1x32xf32> to vector<8x32xf32>
    %213 = arith.addf %209, %212 : vector<8x32xf32>
    %214 = arith.addf %163, %213 : vector<8x32xf32>
    %c0_105 = arith.constant 0 : index
    %c0_106 = arith.constant 0 : index
    %215 = vector.load %arg21[%c0_105, %c0_106] : memref<8x32xf32, #tpu.memory_space<vmem>>, vector<8x32xf32>
    tpu.vector_store %arg21[%c0_105, %c0_106], %214 {strides = array<i32>} : memref<8x32xf32, #tpu.memory_space<vmem>>, vector<8x32xf32>,
    %c1_i32 = arith.constant 1 : i32
    %216 = arith.cmpi eq, %arg1, %c1_i32 : i32
    %217 = arith.extui %216 : i1 to i32
    %c0_i32_107 = arith.constant 0 : i32
    %218 = arith.cmpi ne, %217, %c0_i32_107 : i32
    scf.if %218 {
      %c0_108 = arith.constant 0 : index
      %c0_109 = arith.constant 0 : index
      %219 = vector.load %arg17[%c0_108, %c0_109] : memref<1x32xf32, #tpu.memory_space<vmem>>, vector<1x32xf32>
      %c0_110 = arith.constant 0 : index
      %c0_111 = arith.constant 0 : index
      %220 = vector.load %arg18[%c0_110, %c0_111] : memref<1x32xf32, #tpu.memory_space<vmem>>, vector<1x32xf32>
      %cst_112 = arith.constant dense<0.000000e+00> : vector<8xf32>
      %221 = vector.multi_reduction <add>, %214, %cst_112 [1] : vector<8x32xf32> to vector<8xf32>
      %222 = vector.shape_cast %221 : vector<8xf32> to vector<8x1xf32>
      %cst_113 = arith.constant 3.200000e+01 : f32
      %223 = vector.broadcast %cst_113 : f32 to vector<8x1xf32>
      %224 = arith.divf %222, %223 : vector<8x1xf32>
      %225 = vector.broadcast %224 : vector<8x1xf32> to vector<8x32xf32>
      %226 = arith.subf %214, %225 : vector<8x32xf32>
      %227 = arith.mulf %226, %226 : vector<8x32xf32>
      %cst_114 = arith.constant dense<0.000000e+00> : vector<8xf32>
      %228 = vector.multi_reduction <add>, %227, %cst_114 [1] : vector<8x32xf32> to vector<8xf32>
      %229 = vector.shape_cast %228 : vector<8xf32> to vector<8x1xf32>
      %cst_115 = arith.constant 3.200000e+01 : f32
      %230 = vector.broadcast %cst_115 : f32 to vector<8x1xf32>
      %231 = arith.divf %229, %230 : vector<8x1xf32>
      %232 = vector.broadcast %224 : vector<8x1xf32> to vector<8x32xf32>
      %233 = arith.subf %214, %232 : vector<8x32xf32>
      %cst_116 = arith.constant 9.99999974E-6 : f32
      %234 = vector.broadcast %cst_116 : f32 to vector<8x1xf32>
      %235 = arith.addf %231, %234 : vector<8x1xf32>
      %236 = math.rsqrt %235 : vector<8x1xf32>
      %237 = vector.broadcast %236 : vector<8x1xf32> to vector<8x32xf32>
      %238 = arith.mulf %233, %237 : vector<8x32xf32>
      %239 = vector.broadcast %219 : vector<1x32xf32> to vector<8x32xf32>
      %240 = arith.mulf %238, %239 : vector<8x32xf32>
      %241 = vector.broadcast %220 : vector<1x32xf32> to vector<8x32xf32>
      %242 = arith.addf %240, %241 : vector<8x32xf32>
      %243 = arith.index_cast %arg0 : i32 to index
      %244 = memref.load %arg2[%243] : memref<2xi32, #tpu.memory_space<smem>>
      %245 = tpu.iota {dimensions = array<i32: 1>} : vector<1x8xi32>
      %246 = vector.broadcast %244 : i32 to vector<1x8xi32>
      %247 = arith.cmpi eq, %245, %246 : vector<1x8xi32>
      %cst_117 = arith.constant 1.000000e+00 : f32
      %cst_118 = arith.constant 0.000000e+00 : f32
      %248 = vector.broadcast %cst_117 : f32 to vector<1x8xf32>
      %249 = vector.broadcast %cst_118 : f32 to vector<1x8xf32>
      %250 = arith.select %247, %248, %249 : vector<1x8xi1>, vector<1x8xf32>
      %251 = arith.truncf %250 : vector<1x8xf32> to vector<1x8xbf16>
      %252 = arith.truncf %242 : vector<8x32xf32> to vector<8x32xbf16>
      %cst_119 = arith.constant dense<0.000000e+00> : vector<1x32xf32>
      %253 = tpu.matmul %251, %252, %cst_119 {dimension_numbers = #tpu.dot_dimension_numbers<[1], [0], [0], [1], [0, 0, 1, 1], [], []>} : vector<1x8xbf16>, vector<8x32xbf16>, vector<1x32xf32> -> vector<1x32xf32>
      %254 = arith.truncf %253 : vector<1x32xf32> to vector<1x32xbf16>
      %c0_120 = arith.constant 0 : index
      %c0_121 = arith.constant 0 : index
      %255 = vector.load %arg19[%c0_120, %c0_121] : memref<32x32xbf16, #tpu.memory_space<vmem>>, vector<32x32xbf16>
      %cst_122 = arith.constant dense<0.000000e+00> : vector<1x32xf32>
      %256 = tpu.matmul %254, %255, %cst_122 {dimension_numbers = #tpu.dot_dimension_numbers<[1], [0], [0], [1], [0, 0, 1, 1], [], []>} : vector<1x32xbf16>, vector<32x32xbf16>, vector<1x32xf32> -> vector<1x32xf32>
      %c0_123 = arith.constant 0 : index
      %c0_124 = arith.constant 0 : index
      %c0_125 = arith.constant 0 : index
      %257 = vector.load %arg20[%c0_123, %c0_124, %c0_125] : memref<1x1x32xf32, #tpu.memory_space<vmem>>, vector<1x1x32xf32>
      %258 = vector.shape_cast %257 : vector<1x1x32xf32> to vector<1x32xf32>
      %259 = vector.shape_cast %256 : vector<1x32xf32> to vector<1x1x32xf32>
      tpu.vector_store %arg20[%c0_123, %c0_124, %c0_125], %259 {strides = array<i32>} : memref<1x1x32xf32, #tpu.memory_space<vmem>>, vector<1x1x32xf32>,
    } else {
    }
    return
  }
  func.func @transform_0(%arg0: i32, %arg1: i32, %arg2: memref<2xi32, #tpu.memory_space<smem>>) -> (i32, i32, i32) {
    %c0_i32 = arith.constant 0 : i32
    %c0_i32_0 = arith.constant 0 : i32
    %c0_i32_1 = arith.constant 0 : i32
    return %arg0, %c0_i32, %c0_i32_0 : i32, i32, i32
  }
  func.func @transform_1(%arg0: i32, %arg1: i32, %arg2: memref<2xi32, #tpu.memory_space<smem>>) -> (i32, i32) {
    %c0_i32 = arith.constant 0 : i32
    %c0_i32_0 = arith.constant 0 : i32
    %c0_i32_1 = arith.constant 0 : i32
    return %c0_i32, %c0_i32_0 : i32, i32
  }
  func.func @transform_2(%arg0: i32, %arg1: i32, %arg2: memref<2xi32, #tpu.memory_space<smem>>) -> (i32, i32, i32) {
    %c0_i32 = arith.constant 0 : i32
    %c0_i32_0 = arith.constant 0 : i32
    %c0_i32_1 = arith.constant 0 : i32
    return %arg1, %c0_i32, %c0_i32_0 : i32, i32, i32
  }
  func.func @transform_3(%arg0: i32, %arg1: i32, %arg2: memref<2xi32, #tpu.memory_space<smem>>) -> (i32, i32, i32) {
    %c0_i32 = arith.constant 0 : i32
    %c0_i32_0 = arith.constant 0 : i32
    %c0_i32_1 = arith.constant 0 : i32
    return %arg1, %c0_i32, %c0_i32_0 : i32, i32, i32
  }
  func.func @transform_4(%arg0: i32, %arg1: i32, %arg2: memref<2xi32, #tpu.memory_space<smem>>) -> (i32, i32, i32, i32) {
    %c0_i32 = arith.constant 0 : i32
    %c0_i32_0 = arith.constant 0 : i32
    %c0_i32_1 = arith.constant 0 : i32
    %c0_i32_2 = arith.constant 0 : i32
    return %arg1, %c0_i32, %c0_i32_0, %c0_i32_1 : i32, i32, i32, i32
  }
  func.func @transform_5(%arg0: i32, %arg1: i32, %arg2: memref<2xi32, #tpu.memory_space<smem>>) -> (i32, i32, i32, i32) {
    %c0_i32 = arith.constant 0 : i32
    %c0_i32_0 = arith.constant 0 : i32
    %c0_i32_1 = arith.constant 0 : i32
    %c0_i32_2 = arith.constant 0 : i32
    return %arg1, %c0_i32, %c0_i32_0, %c0_i32_1 : i32, i32, i32, i32
  }
  func.func @transform_6(%arg0: i32, %arg1: i32, %arg2: memref<2xi32, #tpu.memory_space<smem>>) -> (i32, i32, i32, i32) {
    %c0_i32 = arith.constant 0 : i32
    %c0_i32_0 = arith.constant 0 : i32
    %c0_i32_1 = arith.constant 0 : i32
    %c0_i32_2 = arith.constant 0 : i32
    return %arg1, %c0_i32, %c0_i32_0, %c0_i32_1 : i32, i32, i32, i32
  }
  func.func @transform_7(%arg0: i32, %arg1: i32, %arg2: memref<2xi32, #tpu.memory_space<smem>>) -> (i32, i32, i32) {
    %c0_i32 = arith.constant 0 : i32
    %c0_i32_0 = arith.constant 0 : i32
    %c0_i32_1 = arith.constant 0 : i32
    return %arg1, %c0_i32, %c0_i32_0 : i32, i32, i32
  }
  func.func @transform_8(%arg0: i32, %arg1: i32, %arg2: memref<2xi32, #tpu.memory_space<smem>>) -> (i32, i32, i32) {
    %c0_i32 = arith.constant 0 : i32
    %c0_i32_0 = arith.constant 0 : i32
    %c0_i32_1 = arith.constant 0 : i32
    return %arg1, %c0_i32, %c0_i32_0 : i32, i32, i32
  }
  func.func @transform_9(%arg0: i32, %arg1: i32, %arg2: memref<2xi32, #tpu.memory_space<smem>>) -> (i32, i32, i32) {
    %c0_i32 = arith.constant 0 : i32
    %c0_i32_0 = arith.constant 0 : i32
    %c0_i32_1 = arith.constant 0 : i32
    return %arg1, %c0_i32, %c0_i32_0 : i32, i32, i32
  }
  func.func @transform_10(%arg0: i32, %arg1: i32, %arg2: memref<2xi32, #tpu.memory_space<smem>>) -> (i32, i32, i32) {
    %c0_i32 = arith.constant 0 : i32
    %c0_i32_0 = arith.constant 0 : i32
    %c0_i32_1 = arith.constant 0 : i32
    return %arg1, %c0_i32, %c0_i32_0 : i32, i32, i32
  }
  func.func @transform_11(%arg0: i32, %arg1: i32, %arg2: memref<2xi32, #tpu.memory_space<smem>>) -> (i32, i32, i32) {
    %c0_i32 = arith.constant 0 : i32
    %c0_i32_0 = arith.constant 0 : i32
    %c0_i32_1 = arith.constant 0 : i32
    return %arg1, %c0_i32, %c0_i32_0 : i32, i32, i32
  }
  func.func @transform_12(%arg0: i32, %arg1: i32, %arg2: memref<2xi32, #tpu.memory_space<smem>>) -> (i32, i32, i32) {
    %c0_i32 = arith.constant 0 : i32
    %c0_i32_0 = arith.constant 0 : i32
    %c0_i32_1 = arith.constant 0 : i32
    return %arg1, %c0_i32, %c0_i32_0 : i32, i32, i32
  }
  func.func @transform_13(%arg0: i32, %arg1: i32, %arg2: memref<2xi32, #tpu.memory_space<smem>>) -> (i32, i32, i32) {
    %c0_i32 = arith.constant 0 : i32
    %c0_i32_0 = arith.constant 0 : i32
    %c0_i32_1 = arith.constant 0 : i32
    return %arg1, %c0_i32, %c0_i32_0 : i32, i32, i32
  }
  func.func @transform_14(%arg0: i32, %arg1: i32, %arg2: memref<2xi32, #tpu.memory_space<smem>>) -> (i32, i32) {
    %c0_i32 = arith.constant 0 : i32
    %c0_i32_0 = arith.constant 0 : i32
    %c0_i32_1 = arith.constant 0 : i32
    return %c0_i32, %c0_i32_0 : i32, i32
  }
  func.func @transform_15(%arg0: i32, %arg1: i32, %arg2: memref<2xi32, #tpu.memory_space<smem>>) -> (i32, i32) {
    %c0_i32 = arith.constant 0 : i32
    %c0_i32_0 = arith.constant 0 : i32
    %c0_i32_1 = arith.constant 0 : i32
    return %c0_i32, %c0_i32_0 : i32, i32
  }
  func.func @transform_16(%arg0: i32, %arg1: i32, %arg2: memref<2xi32, #tpu.memory_space<smem>>) -> (i32, i32) {
    %c0_i32 = arith.constant 0 : i32
    %c0_i32_0 = arith.constant 0 : i32
    %c0_i32_1 = arith.constant 0 : i32
    return %c0_i32, %c0_i32_0 : i32, i32
  }
  func.func @transform_17(%arg0: i32, %arg1: i32, %arg2: memref<2xi32, #tpu.memory_space<smem>>) -> (i32, i32, i32) {
    %c0_i32 = arith.constant 0 : i32
    %c0_i32_0 = arith.constant 0 : i32
    %c0_i32_1 = arith.constant 0 : i32
    return %arg0, %c0_i32, %c0_i32_0 : i32, i32, i32
  }
}

</mosaic_0001>

<bundles_post_ra>
// kernel: text_encoder_forward.1
= control target key start
LH: loop header
LB: loop body
LE: loop exit
PB: predicated region body
PF: predicated region fallthrough
CT: control target
= control target key end

     0   :  { %s3888_s0 = inlined_call_operand.vmem [shape: s32[2], index: 0, kind: input, shape index: {}]   ;;  %s3889_s1 = inlined_call_operand.hbm [shape: f32[2,8,32], index: 1, kind: input, shape index: {}]   ;;  %s3890_s2 = inlined_call_operand.hbm [shape: f32[8,32], index: 2, kind: input, shape index: {}]   ;;  %s3891_s3 = inlined_call_operand.vmem [shape: f32[2,1,32], index: 3, kind: input, shape index: {}, may-alias: {3,9}]   ;;  %s3892_s4 = inlined_call_operand.vmem [shape: f32[2,1,32], index: 4, kind: input, shape index: {}, may-alias: {4,8,10,14}]   ;;  %s3893_s5 = inlined_call_operand.hbm [shape: bf16[2,3,32,32], index: 5, kind: input, shape index: {}]   ;;  %s3894_s6 = inlined_call_operand.vmem [shape: f32[2,3,1,32], index: 6, kind: input, shape index: {}]   ;;  %s3895_s7 = inlined_call_operand.hbm [shape: bf16[2,4,8,32], index: 7, kind: input, shape index: {}]   ;;  %s3896_s8 = inlined_call_operand.vmem [shape: f32[2,1,32], index: 8, kind: input, shape index: {}, may-alias: {4,8,10,14}]   ;;  %s3897_s9 = inlined_call_operand.vmem [shape: f32[2,1,32], index: 9, kind: input, shape index: {}, may-alias: {3,9}]   ;;  %s3898_s10 = inlined_call_operand.vmem [shape: f32[2,1,32], index: 10, kind: input, shape index: {}, may-alias: {4,8,10,14}]   ;;  %s3899_s11 = inlined_call_operand.vmem [shape: bf16[2,32,128], index: 11, kind: input, shape index: {}]   ;;  %s3900_s12 = inlined_call_operand.vmem [shape: f32[2,1,128], index: 12, kind: input, shape index: {}]   ;;  %s3901_s13 = inlined_call_operand.hbm [shape: bf16[2,128,32], index: 13, kind: input, shape index: {}]   ;;  %s3902_s14 = inlined_call_operand.vmem [shape: f32[2,1,32], index: 14, kind: input, shape index: {}, may-alias: {4,8,10,14}]   ;;  %s3903_s15 = inlined_call_operand.vmem [shape: f32[1,32], index: 15, kind: input, shape index: {}]   ;;  %s3904_s16 = inlined_call_operand.vmem [shape: f32[1,32], index: 16, kind: input, shape index: {}]   ;;  %s3905_s17 = inlined_call_operand.hbm [shape: bf16[32,32], index: 17, kind: input, shape index: {}]   ;;  %s3906_s18 = inlined_call_operand.hbm [shape: f32[2,1,32], index: 18, kind: output, shape index: {}]  }
   0x1   :  { %3927 = sst [smem:[#allocation34_spill]] %s3888_s0 }
   0x2   :  { %3928 = sst [smem:[#allocation35_spill]] %s3889_s1 }
   0x3   :  { %3929 = sst [smem:[#allocation36_spill]] %s3890_s2 }
   0x4   :  { %3930 = sst [smem:[#allocation37_spill]] %s3891_s3 }
   0x5   :  { %3931 = sst [smem:[#allocation38_spill]] %s3892_s4 }
   0x6   :  { %3932 = sst [smem:[#allocation39_spill]] %s3893_s5 }
   0x7   :  { %3933 = sst [smem:[#allocation40_spill]] %s3894_s6 }
   0x8   :  { %3934 = sst [smem:[#allocation41_spill]] %s3895_s7 }
   0x9   :  { %3935 = sst [smem:[#allocation42_spill]] %s3896_s8 }
   0xa   :  { %3936 = sst [smem:[#allocation43_spill]] %s3897_s9 }
   0xb   :  { %3937 = sst [smem:[#allocation44_spill]] %s3898_s10 }
   0xc   :  { %3938 = sst [smem:[#allocation45_spill]] %s3899_s11 }
   0xd   :  { %3939 = sst [smem:[#allocation46_spill]] %s3900_s12 }
   0xe   :  { %3940 = sst [smem:[#allocation47_spill]] %s3901_s13 }
   0xf   :  { %3941 = sst [smem:[#allocation48_spill]] %s3902_s14 }
  0x10   :  { %3942 = sst [smem:[#allocation49_spill]] %s3903_s15 }
  0x11   :  { %3943 = sst [smem:[#allocation50_spill]] %s3904_s16 }
  0x12   :  { %3944 = sst [smem:[#allocation51_spill]] %s3905_s17 }
  0x13   :  { %3945 = sst [smem:[#allocation52_spill]] %s3906_s18 }
  0x14   :  { %s3946_s29 = sld [smem:[#allocation34_spill]] }
  0x1a   :  { %s23_s12 = sshll.u32 %s3946_s29, 4  ;;  %s24_s12 = int_to_ptr.vmem [resolvable:$true] %s23_s12 }
  0x1b   :  { %s2847_s30 = scalar_lea.vmem %s24_s12, 16  ;;  %p2852_p1 = scmp.lt.s32.totalorder %s24_s12, %s24_s12 }
  0x1c   :  { %p2848_p0 = scmp.ne.s32.totalorder %s24_s12, %s2847_s30  ;;  %p2853_p2 = scmp.lt.s32.totalorder %s2847_s30, %s2847_s30 }
  0x1e   :  { %p2854_p3 = por %p2853_p2, %p2852_p1 }
  0x20   :  { %p2855_p4 = pnand %p2854_p3, %p2848_p0 }
  0x22   :  { %2858 = shalt.err (!%p2855_p4)  }
  0x23   :  { %s3159_s0 = smov [#allocation4]  }
  0x24   :  { %26 = dma.vmem_to_smem %s24_s12, 16, %s3159_s0, [#allocation3] }
  0x25   :  { %3093 = dma.done.wait [#allocation3], 16 }
  0x26   :  { %3094 = vsyncadd [#allocation3], 4294967280 }
  0x27   :  { %28 = sfence }
  0x28   :  { %29 = vsyncpa [#allocation6], 0 }
  0x29   :  { %31 = vsyncpa [#allocation6 + $0x1], 0 }
  0x2a   :  { %32 = vsyncpa [#allocation9], 0 }
  0x2b   :  { %33 = vsyncpa [#allocation7], 0 }
  0x2c   :  { %35 = vsyncpa [#allocation7 + $0x1], 0  ;;  %s3275_s19 = smov 0   ;;  %s3277_s1 = smov 0  }
  0x2d   :  { %s3279_s20 = smov 0   ;;  %s3281_s21 = smov 0  }
  0x2e   :  { %s3283_s22 = smov 0   ;;  %s3285_s2 = smov 0  }
  0x2f   :  { %s3287_s12 = smov 0   ;;  %s3289_s23 = smov 0  }
  0x30   :  { %s3291_s24 = smov 0   ;;  %s3293_s25 = smov 0  }
  0x31   :  { %s3295_s26 = smov 0  }
  0x32 LB: > { %3947 = sst [smem:[#allocation21_spill]] %s3121_s1  ;;  %s2370_s27 = sadd.s32 4294967294, %s3157_s26   ;;  %s3157_s26 = sphi %s3295_s26, %s41_s26   ;;  %s3153_s25 = sphi %s3293_s25, %s4023_s25   ;;  %s3149_s24 = sphi %s3291_s24, %s4022_s24   ;;  %s3145_s23 = sphi %s3289_s23, %s4021_s23   ;;  %s3141_s12 = sphi %s3287_s12, %s4020_s12   ;;  %s3137_s2 = sphi %s3285_s2, %s4019_s2   ;;  %s3133_s22 = sphi %s3283_s22, %s4018_s22   ;;  %s3129_s21 = sphi %s3281_s21, %s4017_s21   ;;  %s3125_s20 = sphi %s3279_s20, %s4016_s20   ;;  %s3121_s1 = sphi %s3277_s1, %s4015_s1   ;;  %s3117_s19 = sphi %s3275_s19, %s4014_s19  }
  0x33   : > { %3948 = sst [smem:[#allocation22_spill]] %s3125_s20  ;;  %s50_s28 = sadd.s32 1, %s3149_s24 }
  0x34   : > { %3949 = sst [smem:[#allocation23_spill]] %s3129_s21  ;;  %p51_p5 = scmp.ge.s32.totalorder %s50_s28, 2 }
  0x35   : > { %3950 = sst [smem:[#allocation24_spill]] %s3133_s22  ;;  %s53_s29 = sadd.s32 1, %s3153_s25 }
  0x36   : > { %3951 = sst [smem:[#allocation25_spill]] %s3137_s2  ;;  %s60_s30 = sadd.s32 1, %s3137_s2 }
  0x37   : > { %3952 = sst [smem:[#allocation26_spill]] %s3145_s23  ;;  %p3910_p6 = scmp.ne.s32.totalorder %s3137_s2, %s3133_s22 }
  0x38   : > { %3953 = sst [smem:[#allocation27_spill]] %s3149_s24  ;;  %s4025_s28 = smov (%p51_p5, %s50_s28), 0 }
  0x39   : > { %3954 = sst [smem:[#allocation28_spill]] %s3153_s25  ;;  %s4027_s29 = smov (!%p51_p5, %s53_s29), %s3153_s25 }
  0x3a   : > { %3955 = sst [smem:[#allocation29_spill]] %s4025_s28  ;;  %p68_p7 = scmp.eq.s32.totalorder %s3157_s26, 0 }
  0x3b   : > { %p73_p8 = scmp.ne.s32.totalorder %s3133_s22, %s3129_s21  ;;  %p55_p9 = scmp.ge.s32.totalorder %s4027_s29, 2 }
  0x3c   : > { %s156_s0 = ssub.s32 %s3149_s24, %s4025_s28  ;;  %p3347_p10 = por %p68_p7, %p3910_p6 }
  0x3d   : > { %p157_p11 = scmp.eq.s32.totalorder %s156_s0, 0  ;;  %s4029_s29 = smov (%p55_p9, %s4027_s29), 0 }
  0x3e   : > { %3957 = sst [smem:[#allocation30_spill]] %s4029_s29  ;;  %s159_s16 = sadd.s32 1, %s3125_s20 }
  0x3f   : > { %p166_p12 = scmp.ne.s32.totalorder %s3125_s20, %s3121_s1  ;;  %s57_s15 = ssub.s32 %s3153_s25, %s4029_s29 }
  0x40   : > { %p499_p13 = scmp.eq.s32.totalorder %s2370_s27, 3  ;;  %p58_p0 = scmp.eq.s32.totalorder %s57_s15, 0 }
  0x41   : > { %p3358_p1 = por %p166_p12, %p68_p7  ;;  %p2698_p3 = scmp.lt.s32.totalorder %s3157_s26, 4 }
  0x42   : > { %s3363_s28 = scalar_select %p157_p11, %s3125_s20, %s159_s16  }
  0x43   : > { %s3366_s14 = scalar_select %p58_p0, %s3137_s2, %s60_s30  }
  0x44   : > { %3959 = sst [smem:[#allocation31_spill]] %s3363_s28  ;;  %p3371_p2 = por %p499_p13, %p73_p8 }
  0x45   : > { %3960 = sst [smem:[#allocation32_spill]] %s3366_s14  ;;  %s549_s11 = sand.u32 1, %s3157_s26  }
  0x46   : > { %s3961_s0 = scalar_select %p3371_p2, 1, 0 }
  0x47   : > { %s551_s6 = sand.u32 1, %s3137_s2   ;;  %s2376_s27 = sshll.u32 %s3153_s25, 7 }
  0x48   : > { %3962 = sst [smem:[#allocation33_spill]] %s3961_s0  ;;  %s2375_s29 = sshll.u32 %s551_s6, 3 }
  0x49   : > { %s3963_s9 = sld [smem:[#allocation35_spill]]  ;;  %s553_s4 = scalar_lea.vmem [#allocation5], %s2375_s29 }
  0x4a   : > { %s560_s3 = sshll.u32 %s553_s4, 4  ;;  %p3384_p4 = pnand %p2698_p3, %p3347_p10  ;;  %s561_s3 = int_to_ptr.vmem [resolvable:$true] %s560_s3 }
  0x4b   : > { %p3390_p5 = pnand %p2698_p3, %p3358_p1  ;;  %s3394_s6 = scalar_lea.sflag [#allocation6], %s549_s11 }
  0x4c   : > { %p2861_p7 = pneg %p3384_p4  ;;  %s2872_s10 = scalar_lea.vmem %s561_s3, 128 }
  0x4d   : > { %p2873_p9 = scmp.ne.s32.totalorder %s561_s3, %s2872_s10  ;;  %s3160_s4 = smov [#allocation5]  }
  0x4f   : > { %s558_s8 = scalar_lea.hbm %s3963_s9, %s2376_s27  ;;  %p2875_p11 = pnand %p2873_p9, %p2861_p7 }
  0x50   : > { %s2877_s9 = sshll.u32 %s3160_s4, 4  ;;  %s2878_s9 = int_to_ptr.vmem [resolvable:$false] %s2877_s9 }
  0x51   : > { %p2876_p12 = pneg %p2875_p11  ;;  %s2879_s18 = scalar_lea.vmem %s2878_s9, 256 }
  0x52   : > { %p2880_p10 = scmp.lt.s32.totalorder %s561_s3, %s2878_s9  ;;  %p2881_p13 = scmp.lt.s32.totalorder %s2879_s18, %s2872_s10 }
  0x54   : > { %p2882_p0 = por %p2881_p13, %p2880_p10 }
  0x56   : > { %p2883_p6 = pnand %p2882_p0, %p2876_p12 }
  0x58   : > { %2886 = shalt.err (!%p2883_p6)
}
  0x59   : > { %2682 = dma.hbm_to_vmem [thread:$0]  (!%p3384_p4), %s558_s8, 128, %s561_s3, %s3394_s6  }
  0x5a   : > { %s3402_s11 = sand.u32 1, %s3125_s20   ;;  %s2651_s23 = smul.u32 768, %s3149_s24 }
  0x5b   : > { %s2650_s29 = smul.u32 48, %s3402_s11  ;;  %s3966_s5 = sld [smem:[#allocation39_spill]] }
  0x5c   : > { %p3918_p6 = pneg %p3390_p5  ;;  %s3161_s3 = smov [#allocation10]  }
  0x5d   : > { %s583_s4 = scalar_lea.vmem [#allocation10], %s2650_s29  ;;  %s2905_s8 = sshll.u32 %s3161_s3, 4  ;;  %s2906_s8 = int_to_ptr.vmem [resolvable:$false] %s2905_s8 }
  0x5e   : > { %s590_s9 = sshll.u32 %s583_s4, 4  ;;  %s2907_s18 = scalar_lea.vmem %s2906_s8, 1536  ;;  %s591_s9 = int_to_ptr.vmem [resolvable:$true] %s590_s9 }
  0x5f   : > { %s2900_s16 = scalar_lea.vmem %s591_s9, 768  ;;  %p2908_p7 = scmp.lt.s32.totalorder %s591_s9, %s2906_s8 }
  0x60   : > { %p2901_p1 = scmp.ne.s32.totalorder %s591_s9, %s2900_s16  ;;  %p2909_p9 = scmp.lt.s32.totalorder %s2907_s18, %s2900_s16 }
  0x61   : > { %s589_s10 = scalar_lea.hbm %s3966_s5, %s2651_s23 }
  0x62   : > { %p2903_p3 = pnand %p2901_p1, %p3918_p6  ;;  %p2910_p11 = por %p2909_p9, %p2908_p7 }
  0x64   : > { %p2904_p4 = pneg %p2903_p3 }
  0x66   : > { %p2911_p12 = pnand %p2910_p11, %p2904_p4 }
  0x68   : > { %2914 = shalt.err (!%p2911_p12)
}
  0x69   : > { %s3911_s23 = smov 64   ;;  %s3913_s29 = smov 4  }
  0x6a   : > { %2685 = dma.hbm_to_vmem [thread:$0]  (!%p3390_p5), %s589_s10, 768, %s591_s9, %s3394_s6, %s3911_s23, %s3911_s23, %s3913_s29  }
  0x6b   : > { %s3421_s27 = sadd.s32 4294967295, %s3157_s26   ;;  %p172_p13 = scmp.ne.s32.totalorder %s3121_s1, %s3117_s19 }
  0x6c   : > { %p3917_p10 = scmp.eq.s32.totalorder %s3421_s27, 0  ;;  %p493_p0 = scmp.eq.s32.totalorder %s3421_s27, 3 }
  0x6d   : > { %p2371_p1 = scmp.ge.s32.totalorder %s3157_s26, 1  ;;  %p3969_p7 = scmp.ne.s32.totalorder %s3137_s2, %s3133_s22 }
  0x6e   : > { %p3433_p3 = por %p3917_p10, %p73_p8  ;;  %p3439_p4 = por %p172_p13, %p3917_p10 }
  0x6f   : > { %p3446_p9 = por %p493_p0, %p3969_p7  ;;  %p506_p11 = scmp.lt.s32.totalorder %s3157_s26, 5 }
  0x70   : > { %s3164_s9 = smov [#allocation8]   ;;  %s2378_s3 = sshll.u32 %s3402_s11, 4 }
  0x71   : > { %s3970_s4 = scalar_select %p3446_p9, 1, 0 }
  0x72   : > { %p3451_p12 = pnand %p2371_p1, %p506_p11  ;;  %s519_s16 = sshll.u32 %s3164_s9, 4  ;;  %s520_s16 = int_to_ptr.vmem [resolvable:$true] %s519_s16 }
  0x73   : > { %s2459_s8 = sshll.u32 %s3149_s24, 8  ;;  %s611_s18 = scalar_lea.vmem [#allocation11], %s2378_s3 }
  0x74   : > { %p2672_p8 = pneg %p3451_p12  ;;  %s618_s23 = sshll.u32 %s611_s18, 4  ;;  %s3470_s23 = int_to_ptr.vmem [resolvable:$true] %s618_s23 }
  0x75   : > { %s3973_s7 = sld [smem:[#allocation41_spill]]  ;;  %s3165_s9 = smov [#allocation13]  }
  0x76   : > { %p3461_p13 = pnand %p2672_p8, %p3917_p10  ;;  %s3472_s2 = sshll.u32 %s3165_s9, 4  ;;  %s536_s2 = int_to_ptr.vmem [resolvable:$true] %s3472_s2 }
  0x77   : > { %s2926_s3 = scalar_lea.vmem %s520_s16, 128  ;;  %p2934_p8 = scmp.lt.s32.totalorder %s520_s16, %s520_s16 }
  0x78   : > { %p3920_p0 = pneg %p3461_p13  ;;  %p2927_p1 = scmp.ne.s32.totalorder %s520_s16, %s2926_s3 }
  0x79   : > { %p2935_p10 = scmp.lt.s32.totalorder %s2926_s3, %s2926_s3 }
  0x7a   : > { %p2929_p7 = pnand %p2927_p1, %p3920_p0 }
  0x7b   : > { %s3468_s14 = scalar_lea.hbm %s3973_s7, %s2459_s8  ;;  %p2936_p6 = por %p2935_p10, %p2934_p8 }
  0x7c   : > { %p2930_p11 = pneg %p2929_p7 }
  0x7e   : > { %p2937_p2 = pnand %p2936_p6, %p2930_p11 }
  0x80   : > { %2940 = shalt.err (!%p2937_p2)
}
  0x81   : > { %s3974_s8 = sld [smem:[#allocation36_spill]]  ;;  %s2954_s18 = scalar_lea.vmem %s3470_s23, 256 }
  0x82   : > { %p2955_p9 = scmp.ne.s32.totalorder %s3470_s23, %s2954_s18  ;;  %p3975_p1 = pneg %p3390_p5 }
  0x83   : > { %s3166_s9 = smov [#allocation11]  }
  0x84   : > { %p2957_p7 = pnand %p2955_p9, %p3975_p1  ;;  %s2959_s3 = sshll.u32 %s3166_s9, 4  ;;  %s2960_s3 = int_to_ptr.vmem [resolvable:$false] %s2959_s3 }
  0x85   : > { %s2961_s7 = scalar_lea.vmem %s2960_s3, 512  ;;  %p2962_p2 = scmp.lt.s32.totalorder %s3470_s23, %s2960_s3 }
  0x86   : > { %p2958_p0 = pneg %p2957_p7  ;;  %p2963_p6 = scmp.lt.s32.totalorder %s2961_s7, %s2954_s18 }
  0x87   : > { %2675 = dma.hbm_to_vmem [thread:$0]  (!%p3461_p13), %s3974_s8, 128, %s520_s16, [#allocation9]  }
  0x88   : > { %p2964_p10 = por %p2963_p6, %p2962_p2 }
  0x8a   : > { %p2965_p11 = pnand %p2964_p10, %p2958_p0 }
  0x8c   : > { %2968 = shalt.err (!%p2965_p11)
}
  0x8d   : > { %s3976_s5 = smov 4   ;;  %s3977_s25 = smov 64  }
  0x8e   : > { %2688 = dma.hbm_to_vmem [thread:$0]  (!%p3390_p5), %s3468_s14, 256, %s3470_s23, %s3394_s6, %s3977_s25, %s3977_s25, %s3976_s5  }
  0x8f   : > { %s2381_s16 = sshll.u32 %s3402_s11, 6  ;;  %s2980_s8 = scalar_lea.vmem %s536_s2, 256 }
  0x90   : > { %p2981_p9 = scmp.ne.s32.totalorder %s536_s2, %s2980_s8  ;;  %p3978_p8 = pneg %p3461_p13 }
  0x91   : > { %p2988_p7 = scmp.lt.s32.totalorder %s536_s2, %s536_s2  ;;  %p2989_p2 = scmp.lt.s32.totalorder %s2980_s8, %s2980_s8 }
  0x92   : > { %p2983_p0 = pnand %p2981_p9, %p3978_p8 }
  0x93   : > { %p2990_p6 = por %p2989_p2, %p2988_p7 }
  0x94   : > { %p2984_p1 = pneg %p2983_p0 }
  0x96   : > { %p2991_p10 = pnand %p2990_p6, %p2984_p1 }
  0x98   : > { %2994 = shalt.err (!%p2991_p10)
}
  0x99   : > { %s3979_s17 = sld [smem:[#allocation51_spill]]  ;;  %s2460_s11 = sshll.u32 %s3149_s24, 10 }
  0x9a   : > { %s3980_s13 = sld [smem:[#allocation47_spill]]  ;;  %s664_s3 = scalar_lea.vmem [#allocation12], %s2381_s16 }
  0x9b   : > { %s671_s8 = sshll.u32 %s664_s3, 4  ;;  %p3981_p9 = pneg %p3390_p5  ;;  %s672_s8 = int_to_ptr.vmem [resolvable:$true] %s671_s8 }
  0x9c   : > { %s3008_s28 = scalar_lea.vmem %s672_s8, 1024  ;;  %s3167_s29 = smov [#allocation12]  }
  0x9d   : > { %p3009_p11 = scmp.ne.s32.totalorder %s672_s8, %s3008_s28  ;;  %s3013_s20 = sshll.u32 %s3167_s29, 4  ;;  %s3014_s20 = int_to_ptr.vmem [resolvable:$false] %s3013_s20 }
  0x9e   : > { %s3015_s7 = scalar_lea.vmem %s3014_s20, 2048  ;;  %p3016_p1 = scmp.lt.s32.totalorder %s672_s8, %s3014_s20 }
  0x9f   : > { %2678 = dma.hbm_to_vmem [thread:$0]  (!%p3461_p13), %s3979_s17, 256, %s536_s2, [#allocation9], %s3977_s25, %s3977_s25, %s3976_s5  }
  0xa0   : > { %s670_s9 = scalar_lea.hbm %s3980_s13, %s2460_s11  ;;  %p3011_p8 = pnand %p3009_p11, %p3981_p9 }
  0xa1   : > { %p3017_p13 = scmp.lt.s32.totalorder %s3015_s7, %s3008_s28 }
  0xa2   : > { %p3012_p0 = pneg %p3011_p8 }
  0xa3   : > { %p3018_p7 = por %p3017_p13, %p3016_p1 }
  0xa5   : > { %p3019_p2 = pnand %p3018_p7, %p3012_p0 }
  0xa7   : > { %3022 = shalt.err (!%p3019_p2)
}
  0xa8   : > { %2691 = dma.hbm_to_vmem [thread:$0]  (!%p3390_p5), %s670_s9, 1024, %s672_s8, %s3394_s6, %s3977_s25, %s3977_s25, %s3976_s5  }
  0xa9   : > { %689 = sbr.rel (%p3451_p12) target bundleno = 4459 (0x116b), region = 88  ;;  %s691_s2 = sand.u32 (!%p3451_p12), 1, %s3421_s27  }
  0xaa   : > { %s3528_s16 = sand.u32 (!%p3451_p12), 1, %s3133_s22   ;;  %s692_s28 = scalar_lea.sflag (!%p3451_p12), [#allocation6], %s691_s2 }
  0xab   : > { %s2385_s20 = sshll.u32 (!%p3451_p12), %s3528_s16, 3 }
  0xac   : > { %s3531_s14 = scalar_lea.vmem (!%p3451_p12), [#allocation5], %s2385_s20 }
  0xae   : > { %3096 = dma.done.wait (%p3433_p3), %s692_s28, 128  }
  0xaf   : > { %3098 = vsyncadd (%p3433_p3), %s692_s28, 4294967168  ;;  %p3982_p5 = scmp.eq.s32.totalorder %s3421_s27, 0 }
  0xb1   : > { %3100 = dma.done.wait (%p3982_p5), [#allocation9], 128   ;;  %p3983_p12 = pmov %p3982_p5 }
  0xb2   : > { %s706_s30 = sand.u32 1, %s3121_s1  }
  0xb3   : > { %3102 = vsyncadd (%p3983_p12), [#allocation9], 4294967168  ;;  %s2652_s6 = smul.u32 48, %s706_s30 }
  0xb5   : > { %s3542_s19 = scalar_lea.vmem [#allocation10], %s2652_s6 }
  0xb6   : > { %3104 = dma.done.wait (%p3439_p4), %s692_s28, 2048  }
  0xb7   : > { %3106 = vsyncadd (%p3439_p4), %s692_s28, 4294965248  ;;  %s2387_s15 = sshll.u32 %s706_s30, 4  ;;  %s2388_s5 = sshll.u32 %s706_s30, 6 }
  0xb8   : > { %s3548_s25 = scalar_lea.vmem [#allocation11], %s2387_s15  ;;  %s3550_s11 = scalar_lea.vmem [#allocation12], %s2388_s5 }
  0xb9   : > { %p3984_p3 = pmov %p3982_p5 }
  0xbb   : > { %3108 = dma.done.wait (%p3984_p3), [#allocation9], 256   ;;  %p3985_p6 = pmov %p3984_p3 }
  0xbc   : > { %p825_p10 = scmp.lt.s32.totalorder %s3141_s12, 1  ;;  %s3988_s30 = sld [smem:[#allocation42_spill]] }
  0xbd   : > { %3110 = vsyncadd (%p3985_p6), [#allocation9], 4294967040  ;;  %s3990_s24 = sld [smem:[#allocation44_spill]]  ;;  %s824_s17 = scalar_lea.vmem [#allocation14], %s3528_s16 }
  0xbe   : > { %s3558_s23 = scalar_select %p825_p10, %s3141_s12, 1 }
  0xbf   : > { %s3991_s9 = sld [smem:[#allocation40_spill]]  ;;  %p2392_p4 = scmp.ne.s32.totalorder %s3141_s12, 0 }
  0xc0   : > { %s2653_s2 = smul.u32 3, %s3558_s23  ;;  %s2461_s3 = sshll.u32 %s3558_s23, 4 }
  0xc1   : > { %s3992_s7 = sld [smem:[#allocation45_spill]] }
  0xc2   : > { %s837_s6 = scalar_lea.vmem %s3988_s30, %s3558_s23  ;;  %s3993_s30 = sld [smem:[#allocation46_spill]] }
  0xc3   : > { %s843_s22 = scalar_lea.vmem %s3990_s24, %s3558_s23  ;;  %s3994_s18 = sld [smem:[#allocation48_spill]] }
  0xc5   : > { %s3584_s27 = scalar_lea.vmem %s3991_s9, %s2653_s2  ;;  %859 = sbr.rel (%p2392_p4) target bundleno = 206 (0xce), region = 116 }
  0xc7   : > { %s3590_s21 = scalar_lea.vmem %s3992_s7, %s2461_s3 }
  0xc8   : > { %s851_s15 = scalar_lea.vmem %s3993_s30, %s3558_s23 }
  0xc9   : > { %s854_s13 = scalar_lea.vmem %s3994_s18, %s3558_s23 }
  0xca   : > { %v860_v0 = vld [vmem:[%s3531_s14] sm:$0xff]  ;;  %v861_v1 = vld [vmem:[#allocation8] sm:$0xff]  ;;  %vm863_vm0 = vcmask 261120  }
  0xcb   : > { %v862_v2 = vadd.f32 %v861_v1, %v860_v0 }
  0xcd   : > { %864 = vst.msk [vmem:[#allocation2] sm:$0xff] %vm863_vm0, %v862_v2 }
  0xce PF: > { %vm874_vm1 = vcmask 261120   ;;  %v2803_v10 = vld [vmem:[%s3542_s19 + $0x8] sm:$0xff]   ;;  %v3168_v11 = vmov 0.0   ;;  %vm3169_vm2 = vmmov 0   ;;  %v2804_v12 = vld [vmem:[%s3542_s19] sm:$0xff]   ;;  %s3995_s0 = sld [smem:[#allocation37_spill]]  ;;  %v865_v53 = vlaneseq }
  0xcf   : > { %2512 = vmatprep.subr.bf16.mxu1 %v3168_v11  ;;  %2516 = vmatprep.mubr.msk.bf16.mxu1 %vm3169_vm2, %v3168_v11  ;;  %s3997_s18 = sld [smem:[#allocation38_spill]]  ;;  %v2805_v22 = vld [vmem:[%s3542_s19 + $0x18] sm:$0xff]   ;;  %v2806_v24 = vld [vmem:[%s3542_s19 + $0x10] sm:$0xff]   ;;  %v2807_v25 = vld [vmem:[%s3542_s19 + $0x28] sm:$0xff]   ;;  %vm1103_vm3 = vcmask 64512   ;;  %vm1165_vm4 = vcmask 1043456  }
  0xd0   : > { %2513 = vmatpush3.bf16.msra.mxu1 %v2803_v10  ;;  %2542 = vmatprep.subr.bf16.mxu0 %v3168_v11  ;;  %v2808_v26 = vld [vmem:[%s3542_s19 + $0x20] sm:$0xff]   ;;  %s3170_s19 = smov 120   ;;  %v866_v54 = vshrl.u32 %v865_v53, 7  ;;  %v3674_v55 = vand.u32 127, %v865_v53  ;;  %v3171_v56 = vmov -1e+09  }
  0xd1   : > { %2514 = vmatprep.subr.bf16.mxu1 %v3168_v11  ;;  %2544 = vmatprep.mubr.msk.bf16.mxu0 %vm3169_vm2, %v3168_v11  ;;  %v2404_v31 = vld [vmem:[%s3584_s27 + $0x1] ss:$0 sm:$0xff]  ;;  %v2395_v32 = vld [vmem:[%s3584_s27] ss:$0 sm:$0xff]  ;;  %v2413_v41 = vld [vmem:[%s3584_s27 + $0x2] ss:$0 sm:$0xff] }
  0xd2   : > { %vm869_vm5 = vcmp.le.s32.totalorder %v3674_v55, %v866_v54  ;;  %s3172_s27 = smov 112   ;;  %s3173_s3 = smov 104  }
  0xd3   : > { %v3677_v57 = vsel %vm869_vm5, 0.0, %v3171_v56  ;;  %s4000_s28 = sld [smem:[#allocation43_spill]]  ;;  %p2449_p11 = scmp.ne.s32.totalorder %s3141_s12, 1 }
  0xd4   : > { %v3603_v3 = vld [vmem:[#allocation2] sm:$0xff]  ;;  %2515 = vmatpush3.bf16.msra.mxu1 %v2804_v12  ;;  %s3996_s14 = scalar_lea.vmem %s3995_s0, %s3558_s23  ;;  %s4006_s7 = sld [smem:[#allocation49_spill]] (!%p2449_p11) }
  0xd5   : > { %v875_v4 = vsel %vm874_vm1, %v3603_v3, 0.0  ;;  %2520 = vmatprep.subr.bf16.mxu1 %v3168_v11  ;;  %v2393_v17 = vld [vmem:[%s3996_s14] ss:$0 sm:$0xff]  ;;  %s3998_s9 = scalar_lea.vmem %s3997_s18, %s3558_s23 }
  0xd6   : > { %876 = vadd.xlane.f32.xlu0 %v875_v4  ;;  %v2394_v19 = vld [vmem:[%s3998_s9] ss:$0 sm:$0xff]  ;;  %s4007_s9 = sld [smem:[#allocation50_spill]] (!%p2449_p11) }
  0xd9   : > { %s4001_s30 = scalar_lea.vmem %s4000_s28, %s3558_s23  ;;  %s4005_s23 = sld [smem:[#allocation26_spill]] (!%p2449_p11) }
  0xdf   : > { %s1999_s12 = sld [smem:[#allocation4 + %s4005_s23]] (!%p2449_p11) }
 0x15f   : > { %v877_v5 = vpop.xlane.xlu0 %876 }
 0x160   : > { %v879_v6 = vmul.f32 0.03125, %v877_v5 }
 0x162   : > { %v880_v7 = vsub.f32 %v3603_v3, %v879_v6 }
 0x164   : > { %v881_v8 = vmul.f32 %v880_v7, %v880_v7 }
 0x166   : > { %v882_v9 = vsel %vm874_vm1, %v881_v8, 0.0 }
 0x167   : > { %883 = vadd.xlane.f32.xlu0 %v882_v9 }
 0x1f0   : > { %v884_v13 = vpop.xlane.xlu0 %883 }
 0x1f1   : > { %v885_v14 = vmul.f32 0.03125, %v884_v13 }
 0x1f3   : > { %v886_v15 = vadd.f32 1e-05, %v885_v14 }
 0x1f5   : > { %2819 = vrsqrt.f32 %v886_v15 }
 0x202   : > { %v2820_v16 = vpop.eup %2819 }
 0x203   : > { %v888_v18 = vmul.f32 %v2820_v16, %v880_v7 }
 0x205   : > { %v895_v20 = vmul.f32 %v2393_v17, %v888_v18 }
 0x207   : > { %v902_v21 = vadd.f32 %v2394_v19, %v895_v20 }
 0x209   : > { %v903_v23 = vpack.c.bf16 %v902_v21, %v902_v21 }
 0x20b   : > { %2517 = vmatmul.mubr.msk.bf16.vlgmr.msra.gmra.mxu1 %vm874_vm1, %v903_v23 }
 0x20c   : > { %2521 = vmatpush3.bf16.msra.mxu1 %v2805_v22  ;;  %2524 = vmatprep.mubr.msk.bf16.mxu1 %vm3169_vm2, %v3168_v11  ;;  %v2421_v22 = vld [vmem:[%s3548_s25 + $0x4] sm:$0xf] }
 0x20d   : > { %2522 = vmatprep.subr.bf16.mxu1 %v3168_v11 }
 0x210   : > { %2523 = vmatpush3.bf16.msra.mxu1 %v2806_v24 }
 0x211   : > { %2528 = vmatprep.subr.bf16.mxu1 %v3168_v11 }
 0x213   : > { %2525 = vmatmul.mubr.msk.bf16.vlgmr.msra.gmra.mxu1 %vm874_vm1, %v903_v23 }
 0x214   : > { %2529 = vmatpush3.bf16.msra.mxu1 %v2807_v25  ;;  %2532 = vmatprep.mubr.msk.bf16.mxu1 %vm3169_vm2, %v3168_v11 }
 0x215   : > { %2530 = vmatprep.subr.bf16.mxu1 %v3168_v11 }
 0x218   : > { %2531 = vmatpush3.bf16.msra.mxu1 %v2808_v26 }
 0x219   : > { %2536 = vmatprep.subr.bf16.mxu1 %v3168_v11 }
 0x21b   : > { %2533 = vmatmul.mubr.msk.bf16.vlgmr.msra.gmra.mxu1 %vm874_vm1, %v903_v23  ;;  %v1331_v23 = vsel %vm1165_vm4, %v2421_v22, 0 }
 0x21c   : > { %2538 = vmatprep.mubr.msk.bf16.mxu1 %vm3169_vm2, %v3168_v11 }
 0x2cb   : > { %v964_v27 = vpop.f32.mrf.mxu1 }
 0x2cc   : > { %v965_v36 = vadd.f32 %v2395_v32, %v964_v27 }
 0x2cd   : > { %v2518_v28 = vpop.f32.mrf.mxu1 }
 0x2ce   : > { %v3655_v42 = vpack.c.bf16 %v965_v36, %v965_v36  ;;  %v1210_v28 = vld [vmem:[%s3548_s25] sm:$0xf] }
 0x2cf   : > { %v967_v29 = vpop.f32.mrf.mxu1 }
 0x2d1   : > { %v2519_v30 = vpop.f32.mrf.mxu1 }
 0x2d3   : > { %v1029_v33 = vpop.f32.mrf.mxu1 }
 0x2d4   : > { %v1030_v34 = vadd.f32 %v2404_v31, %v1029_v33  ;;  %v1377_v31 = vsel %vm1165_vm4, %v1210_v28, 0 }
 0x2d5   : > { %v2526_v35 = vpop.f32.mrf.mxu1 }
 0x2d6   : > { %v3648_v37 = vpack.c.bf16 %v1030_v34, %v1030_v34 }
 0x2d7   : > { %v1032_v38 = vpop.f32.mrf.mxu1 }
 0x2d8   : > { %1215 = vrot.lane.b32.xlu1 %v3648_v37, %s3170_s19  ;;  %v1108_v39 = vsel %vm1103_vm3, %v3648_v37, 0 }
 0x2d9   : > { %v2527_v40 = vpop.f32.mrf.mxu1  ;;  %2537 = vmatpush3.bf16.xpose.msra.mxu1 %v1108_v39 }
 0x2da   : > { %2548 = vmatprep.subr.bf16.mxu1 %v3168_v11 }
 0x2db   : > { %v1094_v43 = vpop.f32.mrf.mxu1 }
 0x2dc   : > { %v1095_v44 = vadd.f32 %v2413_v41, %v1094_v43  ;;  %1212 = vrot.lane.b32.xlu1 %v3655_v42, %s3170_s19 }
 0x2dd   : > { %v2534_v45 = vpop.f32.mrf.mxu1 }
 0x2de   : > { %v3660_v46 = vpack.c.bf16 %v1095_v44, %v1095_v44 }
 0x2df   : > { %v1097_v47 = vpop.f32.mrf.mxu1 }
 0x2e0   : > { %2539 = vmatmul.mubr.msk.bf16.vlgmr.msra.gmra.mxu1 %vm1103_vm3, %v3655_v42  ;;  %v1167_v48 = vsel %vm1165_vm4, %v3660_v46, 0 }
 0x2e1   : > { %v2535_v49 = vpop.f32.mrf.mxu1  ;;  %2543 = vmatpush3.bf16.msra.mxu0 %v1167_v48  ;;  %2550 = vmatprep.mubr.msk.bf16.mxu1 %vm3169_vm2, %v3168_v11 }
 0x2e2   : > { %2554 = vmatprep.subr.bf16.mxu0 %v3168_v11 }
 0x34a   : > { %v1216_v50 = vpop.permute.xlu1 %1215 }
 0x34b   : > { %v1221_v51 = vsel %vm1103_vm3, %v1216_v50, 0 }
 0x34c   : > { %2549 = vmatpush3.bf16.xpose.msra.mxu1 %v1221_v51 }
 0x34d   : > { %2560 = vmatprep.subr.bf16.mxu1 %v3168_v11 }
 0x34e   : > { %v1213_v52 = vpop.permute.xlu1 %1212 }
 0x353   : > { %2551 = vmatmul.mubr.msk.bf16.vlgmr.msra.gmra.mxu1 %vm1103_vm3, %v1213_v52 }
 0x354   : > { %2562 = vmatprep.mubr.msk.bf16.mxu1 %vm3169_vm2, %v3168_v11  ;;  %2561 = vmatpush3.bf16.msra.mxu1 %v1331_v23 }
 0x355   : > { %2572 = vmatprep.subr.bf16.mxu1 %v3168_v11 }
 0x3a0   : > { %v1144_v58 = vpop.f32.mrf.mxu1 }
 0x3a1   : > { %v1145_v59 = vadd.f32 %v1144_v58, %v3677_v57 }
 0x3a2   : > { %v2540_v60 = vpop.f32.mrf.mxu1 }
 0x3a3   : > { %v1150_v61 = vsel %vm1103_vm3, %v1145_v59, -inf }
 0x3a4   : > { %v1147_v62 = vpop.f32.mrf.mxu1  ;;  %1151 = vmax.xlane.f32.xlu0 %v1150_v61 }
 0x3a6   : > { %v2541_v63 = vpop.f32.mrf.mxu1 }
 0x413   : > { %v1257_v0 = vpop.f32.mrf.mxu1 }
 0x414   : > { %v1258_v1 = vadd.f32 %v1257_v0, %v3677_v57 }
 0x415   : > { %v2552_v2 = vpop.f32.mrf.mxu1 }
 0x416   : > { %v1263_v4 = vsel %vm1103_vm3, %v1258_v1, -inf }
 0x417   : > { %v1260_v5 = vpop.f32.mrf.mxu1  ;;  %1264 = vmax.xlane.f32.xlu1 %v1263_v4 }
 0x419   : > { %v2553_v6 = vpop.f32.mrf.mxu1 }
 0x428   : > { %1419 = vrot.lane.b32.xlu1 %v3655_v42, %s3172_s27 }
 0x42d   : > { %v1152_v7 = vpop.xlane.xlu0 %1151 }
 0x42e   : > { %v1153_v8 = vsub.f32 %v1145_v59, %v1152_v7 }
 0x430   : > { %v1154_v9 = vmul.f32 1.442695, %v1153_v8 }
 0x432   : > { %2821 = vpow2.f32 %v1154_v9 }
 0x43f   : > { %v2822_v10 = vpop.eup %2821 }
 0x440   : > { %v1156_v12 = vsel %vm1103_vm3, %v2822_v10, 0.0 }
 0x441   : > { %1157 = vadd.xlane.f32.xlu0 %v1156_v12 }
 0x4a0   : > { %v1265_v13 = vpop.xlane.xlu1 %1264 }
 0x4a1   : > { %v1266_v14 = vsub.f32 %v1258_v1, %v1265_v13 }
 0x4a3   : > { %v1267_v15 = vmul.f32 1.442695, %v1266_v14 }
 0x4a4   : > { %v1420_v47 = vpop.permute.xlu1 %1419 }
 0x4a5   : > { %2823 = vpow2.f32 %v1267_v15 }
 0x4b2   : > { %v2824_v16 = vpop.eup %2823 }
 0x4b3   : > { %v1269_v17 = vsel %vm1103_vm3, %v2824_v16, 0.0 }
 0x4b4   : > { %1270 = vadd.xlane.f32.xlu0 %v1269_v17 }
 0x4ca   : > { %1276 = vrot.lane.b32.xlu0 %v3660_v46, %s3170_s19  ;;  %v1158_v18 = vpop.xlane.xlu0 %1157 }
 0x4cb   : > { %2825 = vrcp.f32 %v1158_v18 }
 0x4ce   : > { %1421 = vrot.lane.b32.xlu0 %v3648_v37, %s3172_s27 }
 0x4d8   : > { %v2826_v19 = vpop.eup %2825 }
 0x4d9   : > { %v1160_v20 = vmul.f32 %v2826_v19, %v2822_v10 }
 0x4db   : > { %v1161_v21 = vpack.c.bf16 %v1160_v20, %v1160_v20 }
 0x4dd   : > { %2545 = vmatmul.mubr.msk.bf16.vlgmr.msra.gmra.mxu0 %vm1103_vm3, %v1161_v21 }
 0x4de   : > { %2556 = vmatprep.mubr.msk.bf16.mxu0 %vm3169_vm2, %v3168_v11 }
 0x53d   : > { %v1271_v24 = vpop.xlane.xlu0 %1270 }
 0x53e   : > { %2827 = vrcp.f32 %v1271_v24 }
 0x541   : > { %v1277_v25 = vpop.permute.xlu0 %1276 }
 0x542   : > { %v1282_v26 = vsel %vm1165_vm4, %v1277_v25, 0 }
 0x543   : > { %2555 = vmatpush3.bf16.msra.mxu0 %v1282_v26 }
 0x544   : > { %2566 = vmatprep.subr.bf16.mxu0 %v3168_v11 }
 0x545   : > { %v1422_v38 = vpop.permute.xlu0 %1421 }
 0x546   : > { %v1427_v43 = vsel %vm1103_vm3, %v1422_v38, 0 }
 0x54b   : > { %v2828_v27 = vpop.eup %2827 }
 0x54c   : > { %v1273_v29 = vmul.f32 %v2828_v27, %v2824_v16 }
 0x54e   : > { %v1274_v30 = vpack.c.bf16 %v1273_v29, %v1273_v29 }
 0x550   : > { %2557 = vmatmul.mubr.msk.bf16.vlgmr.msra.gmra.mxu0 %vm1103_vm3, %v1274_v30 }
 0x551   : > { %2567 = vmatpush3.bf16.msra.mxu0 %v1377_v31  ;;  %2568 = vmatprep.mubr.msk.bf16.mxu0 %vm3169_vm2, %v3168_v11 }
 0x552   : > { %2578 = vmatprep.subr.bf16.mxu0 %v3168_v11 }
 0x59d   : > { %v1203_v32 = vpop.f32.mrf.mxu0 }
 0x59e   : > { %v1209_v33 = vpack.c.bf16 %v1203_v32, %v1203_v32 }
 0x59f   : > { %v2546_v34 = vpop.f32.mrf.mxu0 }
 0x5a0   : > { %2569 = vmatmul.mubr.msk.bf16.vlgmr.msra.gmra.mxu0 %vm1103_vm3, %v1209_v33 }
 0x5a1   : > { %v1206_v35 = vpop.f32.mrf.mxu0  ;;  %2580 = vmatprep.mubr.msk.bf16.mxu0 %vm3169_vm2, %v3168_v11 }
 0x5a3   : > { %v2547_v36 = vpop.f32.mrf.mxu0 }
 0x5a4   : > { %v2430_v36 = vld [vmem:[%s3548_s25 + $0xc] sm:$0xf] }
 0x5a5   : > { %v1696_v38 = vsel %vm1165_vm4, %v2430_v36, 0 }
 0x610   : > { %v1318_v39 = vpop.f32.mrf.mxu0 }
 0x611   : > { %v1324_v40 = vpack.c.bf16 %v1318_v39, %v1318_v39 }
 0x612   : > { %v2558_v41 = vpop.f32.mrf.mxu0 }
 0x613   : > { %2563 = vmatmul.mubr.msk.bf16.vlgmr.msra.gmra.mxu1 %vm1103_vm3, %v1324_v40 }
 0x614   : > { %2573 = vmatpush3.bf16.xpose.msra.mxu1 %v1427_v43  ;;  %v1321_v44 = vpop.f32.mrf.mxu0  ;;  %2574 = vmatprep.mubr.msk.bf16.mxu1 %vm3169_vm2, %v3168_v11 }
 0x615   : > { %2584 = vmatprep.subr.bf16.mxu1 %v3168_v11 }
 0x616   : > { %v2559_v45 = vpop.f32.mrf.mxu0 }
 0x61b   : > { %2575 = vmatmul.mubr.msk.bf16.vlgmr.msra.gmra.mxu1 %vm1103_vm3, %v1420_v47 }
 0x61c   : > { %2586 = vmatprep.mubr.msk.bf16.mxu1 %vm3169_vm2, %v3168_v11 }
 0x660   : > { %v3716_v48 = vpop.f32.mrf.mxu0 }
 0x662   : > { %v2570_v49 = vpop.f32.mrf.mxu0 }
 0x664   : > { %v1416_v50 = vpop.f32.mrf.mxu0 }
 0x666   : > { %v2571_v51 = vpop.f32.mrf.mxu0 }
 0x6d3   : > { %v3718_v52 = vpop.f32.mrf.mxu1 }
 0x6d4   : > { %v1414_v33 = vadd.f32 %v3716_v48, %v3718_v52 }
 0x6d5   : > { %v2564_v53 = vpop.f32.mrf.mxu1 }
 0x6d7   : > { %v1370_v54 = vpop.f32.mrf.mxu1 }
 0x6d8   : > { %v2432_v54 = vld [vmem:[%s837_s6] ss:$0 sm:$0xff] }
 0x6d9   : > { %v2565_v56 = vpop.f32.mrf.mxu1 }
 0x6db   : > { %v1463_v58 = vpop.f32.mrf.mxu1 }
 0x6dc   : > { %v1464_v59 = vadd.f32 %v1463_v58, %v3677_v57 }
 0x6dd   : > { %v2576_v60 = vpop.f32.mrf.mxu1 }
 0x6de   : > { %v1469_v61 = vsel %vm1103_vm3, %v1464_v59, -inf }
 0x6df   : > { %1470 = vmax.xlane.f32.xlu0 %v1469_v61  ;;  %v1466_v62 = vpop.f32.mrf.mxu1 }
 0x6e1   : > { %v2577_v63 = vpop.f32.mrf.mxu1 }
 0x6f5   : > { %1481 = vrot.lane.b32.xlu0 %v3660_v46, %s3172_s27 }
 0x6f9   : > { %1579 = vrot.lane.b32.xlu0 %v3655_v42, %s3173_s3 }
 0x768   : > { %v1471_v0 = vpop.xlane.xlu0 %1470 }
 0x769   : > { %v1472_v1 = vsub.f32 %v1464_v59, %v1471_v0 }
 0x76b   : > { %v1473_v2 = vmul.f32 1.442695, %v1472_v1 }
 0x76c   : > { %v1482_v4 = vpop.permute.xlu0 %1481 }
 0x76d   : > { %2829 = vpow2.f32 %v1473_v2  ;;  %v1487_v5 = vsel %vm1165_vm4, %v1482_v4, 0 }
 0x76e   : > { %2579 = vmatpush3.bf16.msra.mxu0 %v1487_v5  ;;  %v2809_v5 = vld [vmem:[%s3590_s21 + $0x8] sm:$0xff]  }
 0x76f   : > { %2590 = vmatprep.subr.bf16.mxu0 %v3168_v11 }
 0x770   : > { %v1580_v14 = vpop.permute.xlu0 %1579 }
 0x77a   : > { %v2830_v6 = vpop.eup %2829 }
 0x77b   : > { %v1475_v7 = vsel %vm1103_vm3, %v2830_v6, 0.0 }
 0x77c   : > { %1476 = vadd.xlane.f32.xlu1 %v1475_v7 }
 0x78d   : > { %1581 = vrot.lane.b32.xlu1 %v3648_v37, %s3173_s3  ;;  %v2426_v37 = vld [vmem:[%s3548_s25 + $0x8] sm:$0xf] }
 0x78e   : > { %v1536_v15 = vsel %vm1165_vm4, %v2426_v37, 0 }
 0x78f   : > { %2585 = vmatpush3.bf16.msra.mxu1 %v1536_v15  ;;  %v2811_v15 = vld [vmem:[%s3550_s11 + $0x38] sm:$0xff]  }
 0x790   : > { %2596 = vmatprep.subr.bf16.mxu1 %v3168_v11 }
 0x805   : > { %v1477_v8 = vpop.xlane.xlu1 %1476 }
 0x806   : > { %2831 = vrcp.f32 %v1477_v8 }
 0x809   : > { %v1582_v10 = vpop.permute.xlu1 %1581 }
 0x80a   : > { %v1587_v13 = vsel %vm1103_vm3, %v1582_v10, 0 }
 0x813   : > { %v2832_v42 = vpop.eup %2831 }
 0x814   : > { %v1479_v9 = vmul.f32 %v2832_v42, %v2830_v6 }
 0x816   : > { %v1480_v12 = vpack.c.bf16 %v1479_v9, %v1479_v9  ;;  %v2433_v9 = vld [vmem:[%s4001_s30] ss:$0 sm:$0xff] }
 0x818   : > { %2581 = vmatmul.mubr.msk.bf16.vlgmr.msra.gmra.mxu0 %vm1103_vm3, %v1480_v12  ;;  %v2434_v12 = vld [vmem:[%s843_s22] ss:$0 sm:$0xff] }
 0x819   : > { %2591 = vmatpush3.bf16.xpose.msra.mxu0 %v1587_v13  ;;  %2592 = vmatprep.mubr.msk.bf16.mxu0 %vm3169_vm2, %v3168_v11 }
 0x81a   : > { %2602 = vmatprep.subr.bf16.mxu0 %v3168_v11 }
 0x820   : > { %2593 = vmatmul.mubr.msk.bf16.vlgmr.msra.gmra.mxu0 %vm1103_vm3, %v1580_v14 }
 0x821   : > { %2604 = vmatprep.mubr.msk.bf16.mxu0 %vm3169_vm2, %v3168_v11  ;;  %2603 = vmatpush3.bf16.msra.mxu0 %v1696_v38 }
 0x822   : > { %2616 = vmatprep.subr.bf16.mxu0 %v3168_v11 }
 0x8d8   : > { %v1523_v16 = vpop.f32.mrf.mxu0 }
 0x8d9   : > { %v1529_v17 = vpack.c.bf16 %v1523_v16, %v1523_v16  ;;  %v2812_v16 = vld [vmem:[%s3550_s11 + $0x30] sm:$0xff]  }
 0x8da   : > { %v2582_v18 = vpop.f32.mrf.mxu0 }
 0x8db   : > { %2587 = vmatmul.mubr.msk.bf16.vlgmr.msra.gmra.mxu1 %vm1103_vm3, %v1529_v17  ;;  %v2813_v17 = vld [vmem:[%s3550_s11 + $0x28] sm:$0xff]   ;;  %v2814_v18 = vld [vmem:[%s3550_s11 + $0x20] sm:$0xff]  }
 0x8dc   : > { %v1526_v19 = vpop.f32.mrf.mxu0  ;;  %2598 = vmatprep.mubr.msk.bf16.mxu1 %vm3169_vm2, %v3168_v11 }
 0x8dd   : > { %v2815_v19 = vld [vmem:[%s3550_s11 + $0x18] sm:$0xff]  }
 0x8de   : > { %v2583_v20 = vpop.f32.mrf.mxu0 }
 0x8df   : > { %v2816_v20 = vld [vmem:[%s3550_s11 + $0x10] sm:$0xff]  }
 0x8e0   : > { %v1623_v21 = vpop.f32.mrf.mxu0 }
 0x8e1   : > { %v1624_v22 = vadd.f32 %v1623_v21, %v3677_v57  ;;  %v2817_v21 = vld [vmem:[%s3550_s11 + $0x8] sm:$0xff]  }
 0x8e2   : > { %v2594_v23 = vpop.f32.mrf.mxu0 }
 0x8e3   : > { %v1629_v24 = vsel %vm1103_vm3, %v1624_v22, -inf  ;;  %v2435_v23 = vld [vmem:[%s851_s15] ss:$0 sm:$0xff] }
 0x8e4   : > { %1630 = vmax.xlane.f32.xlu0 %v1629_v24  ;;  %v1626_v25 = vpop.f32.mrf.mxu0 }
 0x8e6   : > { %v2595_v26 = vpop.f32.mrf.mxu0 }
 0x8fa   : > { %1641 = vrot.lane.b32.xlu0 %v3660_v46, %s3173_s3 }
 0x96d   : > { %v1631_v27 = vpop.xlane.xlu0 %1630 }
 0x96e   : > { %v1632_v28 = vsub.f32 %v1624_v22, %v1631_v27  ;;  %v2818_v22 = vld [vmem:[%s3550_s11] sm:$0xff]  }
 0x970   : > { %v1633_v29 = vmul.f32 1.442695, %v1632_v28 }
 0x971   : > { %v1642_v30 = vpop.permute.xlu0 %1641 }
 0x972   : > { %2833 = vpow2.f32 %v1633_v29  ;;  %v1647_v31 = vsel %vm1165_vm4, %v1642_v30, 0 }
 0x973   : > { %2597 = vmatpush3.bf16.msra.mxu1 %v1647_v31 }
 0x974   : > { %2608 = vmatprep.subr.bf16.mxu1 %v3168_v11 }
 0x97f   : > { %v2834_v57 = vpop.eup %2833 }
 0x980   : > { %v1635_v32 = vsel %vm1103_vm3, %v2834_v57, 0.0 }
 0x981   : > { %1636 = vadd.xlane.f32.xlu1 %v1635_v32 }
 0x99b   : > { %v1572_v34 = vpop.f32.mrf.mxu1 }
 0x99c   : > { %v1578_v46 = vadd.f32 %v1572_v34, %v1414_v33  ;;  %v2440_v34 = vld [vmem:[%s854_s13] ss:$0 sm:$0xff] }
 0x99d   : > { %v2588_v35 = vpop.f32.mrf.mxu1 }
 0x99f   : > { %v1575_v39 = vpop.f32.mrf.mxu1 }
 0x9a1   : > { %v2589_v40 = vpop.f32.mrf.mxu1 }
 0xa0a   : > { %v1637_v41 = vpop.xlane.xlu1 %1636 }
 0xa0b   : > { %2835 = vrcp.f32 %v1637_v41 }
 0xa18   : > { %v2836_v43 = vpop.eup %2835 }
 0xa19   : > { %v1639_v44 = vmul.f32 %v2836_v43, %v2834_v57 }
 0xa1b   : > { %v1640_v45 = vpack.c.bf16 %v1639_v44, %v1639_v44 }
 0xa1d   : > { %2599 = vmatmul.mubr.msk.bf16.vlgmr.msra.gmra.mxu1 %vm1103_vm3, %v1640_v45 }
 0xa1e   : > { %2612 = vmatprep.mubr.msk.bf16.mxu1 %vm3169_vm2, %v3168_v11  ;;  %2609 = vmatpush3.bf16.msra.mxu1 %v2809_v5 }
 0xa1f   : > { %2610 = vmatprep.subr.bf16.mxu1 %v3168_v11 }
 0xadd   : > { %v1683_v47 = vpop.f32.mrf.mxu1 }
 0xade   : > { %v1689_v48 = vpack.c.bf16 %v1683_v47, %v1683_v47 }
 0xadf   : > { %v2600_v49 = vpop.f32.mrf.mxu1 }
 0xae0   : > { %2605 = vmatmul.mubr.msk.bf16.vlgmr.msra.gmra.mxu0 %vm1103_vm3, %v1689_v48 }
 0xae1   : > { %v1686_v50 = vpop.f32.mrf.mxu1  ;;  %2632 = vmatprep.mubr.msk.bf16.mxu0 %vm3169_vm2, %v3168_v11  ;;  %2617 = vmatpush3.bf16.msra.mxu0 %v2811_v15 }
 0xae2   : > { %2618 = vmatprep.subr.bf16.mxu0 %v3168_v11 }
 0xae3   : > { %v2601_v51 = vpop.f32.mrf.mxu1 }
 0xae5   : > { %2619 = vmatpush3.bf16.msra.mxu0 %v2812_v16 }
 0xae6   : > { %2620 = vmatprep.subr.bf16.mxu0 %v3168_v11 }
 0xae9   : > { %2621 = vmatpush3.bf16.msra.mxu0 %v2813_v17 }
 0xaea   : > { %2622 = vmatprep.subr.bf16.mxu0 %v3168_v11 }
 0xaed   : > { %2623 = vmatpush3.bf16.msra.mxu0 %v2814_v18 }
 0xaee   : > { %2624 = vmatprep.subr.bf16.mxu0 %v3168_v11 }
 0xaf1   : > { %2625 = vmatpush3.bf16.msra.mxu0 %v2815_v19 }
 0xaf2   : > { %2626 = vmatprep.subr.bf16.mxu0 %v3168_v11 }
 0xaf5   : > { %2627 = vmatpush3.bf16.msra.mxu0 %v2816_v20 }
 0xaf6   : > { %2628 = vmatprep.subr.bf16.mxu0 %v3168_v11 }
 0xaf9   : > { %2629 = vmatpush3.bf16.msra.mxu0 %v2817_v21 }
 0xafa   : > { %2630 = vmatprep.subr.bf16.mxu0 %v3168_v11 }
 0xafd   : > { %2631 = vmatpush3.bf16.msra.mxu0 %v2818_v22 }
 0xba0   : > { %v1732_v52 = vpop.f32.mrf.mxu0 }
 0xba1   : > { %v1738_v53 = vadd.f32 %v1732_v52, %v1578_v46 }
 0xba2   : > { %v2606_v56 = vpop.f32.mrf.mxu0 }
 0xba3   : > { %v1739_v58 = vadd.f32 %v1738_v53, %v3603_v3  ;;  %v2810_v3 = vld [vmem:[%s3590_s21] sm:$0xff]  }
 0xba4   : > { %v1735_v59 = vpop.f32.mrf.mxu0  ;;  %2611 = vmatpush3.bf16.msra.mxu1 %v2810_v3 }
 0xba5   : > { %v3769_v60 = vadd.f32 %v2432_v54, %v1739_v58 }
 0xba6   : > { %v2607_v61 = vpop.f32.mrf.mxu0 }
 0xba7   : > { %v1750_v62 = vsel %vm874_vm1, %v3769_v60, 0.0 }
 0xba8   : > { %1751 = vadd.xlane.f32.xlu1 %v1750_v62 }
 0xc31   : > { %v1752_v63 = vpop.xlane.xlu1 %1751 }
 0xc32   : > { %v1753_v0 = vmul.f32 0.03125, %v1752_v63 }
 0xc34   : > { %v1754_v1 = vsub.f32 %v3769_v60, %v1753_v0 }
 0xc36   : > { %v1755_v2 = vmul.f32 %v1754_v1, %v1754_v1 }
 0xc38   : > { %v1756_v4 = vsel %vm874_vm1, %v1755_v2, 0.0 }
 0xc39   : > { %1757 = vadd.xlane.f32.xlu1 %v1756_v4 }
 0xcc2   : > { %v1758_v6 = vpop.xlane.xlu1 %1757 }
 0xcc3   : > { %v1759_v7 = vmul.f32 0.03125, %v1758_v6 }
 0xcc5   : > { %v1760_v8 = vadd.f32 1e-05, %v1759_v7 }
 0xcc7   : > { %2837 = vrsqrt.f32 %v1760_v8 }
 0xcd4   : > { %v2838_v42 = vpop.eup %2837 }
 0xcd5   : > { %v1762_v10 = vmul.f32 %v2838_v42, %v1754_v1 }
 0xcd7   : > { %v1769_v13 = vmul.f32 %v2433_v9, %v1762_v10 }
 0xcd9   : > { %v1776_v14 = vadd.f32 %v2434_v12, %v1769_v13 }
 0xcdb   : > { %v1777_v37 = vpack.c.bf16 %v1776_v14, %v1776_v14 }
 0xcdd   : > { %2613 = vmatmul.mubr.msk.bf16.vlgmr.msra.gmra.mxu1 %vm874_vm1, %v1777_v37 }
 0xd9d   : > { %v1838_v24 = vpop.f32.mrf.mxu1 }
 0xd9e   : > { %v1839_v25 = vadd.f32 %v2435_v23, %v1838_v24 }
 0xd9f   : > { %v2614_v26 = vpop.f32.mrf.mxu1 }
 0xda0   : > { %v2439_v27 = vmul.f32 -1.702, %v1839_v25 }
 0xda1   : > { %v1841_v28 = vpop.f32.mrf.mxu1 }
 0xda2   : > { %v1846_v29 = vmul.f32 1.442695, %v2439_v27 }
 0xda3   : > { %v2615_v30 = vpop.f32.mrf.mxu1 }
 0xda4   : > { %2839 = vpow2.f32 %v1846_v29 }
 0xdb1   : > { %v2840_v31 = vpop.eup %2839 }
 0xdb2   : > { %v1848_v57 = vadd.f32 1.0, %v2840_v31 }
 0xdb4   : > { %2841 = vrcp.f32 %v1848_v57 }
 0xdc1   : > { %v2842_v11 = vpop.eup %2841 }
 0xdc2   : > { %v1851_v32 = vmul.f32 %v2842_v11, %v1839_v25 }
 0xdc4   : > { %v1852_v33 = vpack.c.bf16 %v1851_v32, %v1851_v32 }
 0xdc6   : > { %2633 = vmatmul.mubr.bf16.vlgmr.msra.gmra.mxu0 %v1852_v33 }
 0xe86   : > { %v1958_v46 = vpop.f32.mrf.mxu0 }
 0xe87   : > { %v1959_v35 = vadd.f32 %v2440_v34, %v1958_v46 }
 0xe88   : > { %v2634_v36 = vpop.f32.mrf.mxu0  ;;  %1969 = sbr.rel (%p2449_p11) target bundleno = 4433 (0x1151), region = 120 }
 0xe89   : > { %v1964_v38 = vadd.f32 %v1959_v35, %v3769_v60 }
 0xe8a   : > { %v1961_v39 = vpop.f32.mrf.mxu0 }
 0xe8b   : > { %1965 = vst.msk [vmem:[#allocation2] sm:$0xff] %vm874_vm1, %v1964_v38 }
 0xe8c   : > { %v2635_v40 = vpop.f32.mrf.mxu0 }
 0xe8d   : > { %v1972_v41 = vsel %vm874_vm1, %v1964_v38, 0.0  ;;  %v3174_v49 = vmov 0.0   ;;  %vm3175_vm6 = vmmov 0   ;;  %v2843_v50 = vld [vmem:[#allocation13 + $0x8] sm:$0xff]   ;;  %v2450_v56 = vld [vmem:[%s4006_s7] ss:$0 sm:$0xff]  ;;  %v2000_v58 = vstv %s1999_s12 }
 0xe8e   : > { %1973 = vadd.xlane.f32.xlu0 %v1972_v41  ;;  %2636 = vmatprep.subr.bf16.mxu0 %v3174_v49  ;;  %v2451_v60 = vld [vmem:[%s4007_s9] ss:$0 sm:$0xff]  ;;  %vm2001_vm7 = vcmp.eq.s32.totalorder %v3674_v55, %v2000_v58  ;;  %vm2111_vm8 = vcmask 253952  }
 0xe8f   : > { %2642 = vmatprep.subr.bf16.mxu1 %v3174_v49  ;;  %2638 = vmatprep.mubr.msk.bf16.mxu0 %vm3175_vm6, %v3174_v49  ;;  %v2002_v63 = vsel %vm2001_vm7, 1.0, %v3174_v49  ;;  %v2844_v4 = vld [vmem:[#allocation13] sm:$0xff]  }
 0xe90   : > { %2646 = vmatprep.mubr.msk.bf16.mxu1 %vm3175_vm6, %v3174_v49  ;;  %2643 = vmatpush3.bf16.msra.mxu1 %v2843_v50  ;;  %v2003_v2 = vpack.c.bf16 %v2002_v63, %v2002_v63 }
 0xe91   : > { %2644 = vmatprep.subr.bf16.mxu1 %v3174_v49 }
 0xe94   : > { %2645 = vmatpush3.bf16.msra.mxu1 %v2844_v4 }
 0xf17   : > { %v1974_v43 = vpop.xlane.xlu0 %1973 }
 0xf18   : > { %v1975_v44 = vmul.f32 0.03125, %v1974_v43 }
 0xf1a   : > { %v1976_v45 = vsub.f32 %v1964_v38, %v1975_v44 }
 0xf1c   : > { %v1977_v47 = vmul.f32 %v1976_v45, %v1976_v45 }
 0xf1e   : > { %v1978_v48 = vsel %vm874_vm1, %v1977_v47, 0.0 }
 0xf1f   : > { %1979 = vadd.xlane.f32.xlu0 %v1978_v48 }
 0xfa8   : > { %v1980_v51 = vpop.xlane.xlu0 %1979 }
 0xfa9   : > { %v1981_v52 = vmul.f32 0.03125, %v1980_v51 }
 0xfab   : > { %v1982_v53 = vadd.f32 1e-05, %v1981_v52 }
 0xfad   : > { %2845 = vrsqrt.f32 %v1982_v53 }
 0xfba   : > { %v2846_v54 = vpop.eup %2845 }
 0xfbb   : > { %v1984_v59 = vmul.f32 %v2846_v54, %v1976_v45 }
 0xfbd   : > { %v1991_v61 = vmul.f32 %v2450_v56, %v1984_v59 }
 0xfbf   : > { %v1998_v62 = vadd.f32 %v2451_v60, %v1991_v61 }
 0xfc1   : > { %v2004_v0 = vpack.c.bf16 %v1998_v62, %v1998_v62 }
 0xfc3   : > { %v2009_v1 = vsel %vm1165_vm4, %v2004_v0, 0 }
 0xfc4   : > { %2637 = vmatpush3.bf16.msra.mxu0 %v2009_v1 }
 0xfc7   : > { %2639 = vmatmul.mubr.msk.bf16.vlgmr.msra.gmra.mxu0 %vm1103_vm3, %v2003_v2 }
0x1087   : > { %v2045_v5 = vpop.f32.mrf.mxu0 }
0x1088   : > { %v2051_v3 = vpack.c.bf16 %v2045_v5, %v2045_v5 }
0x1089   : > { %v2640_v6 = vpop.f32.mrf.mxu0 }
0x108a   : > { %2647 = vmatmul.mubr.msk.bf16.vlgmr.msra.gmra.mxu1 %vm874_vm1, %v2051_v3 }
0x108b   : > { %v2048_v7 = vpop.f32.mrf.mxu0 }
0x108d   : > { %v2641_v8 = vpop.f32.mrf.mxu0 }
0x114a   : > { %v2105_v55 = vpop.f32.mrf.mxu1 }
0x114b   : > { %2112 = vst.msk [vmem:[%s824_s17] sm:$0x1] %vm2111_vm8, %v2105_v55 }
0x114c   : > { %v2648_v42 = vpop.f32.mrf.mxu1 }
0x114e   : > { %v2108_v9 = vpop.f32.mrf.mxu1 }
0x1150   : > { %v2649_v10 = vpop.f32.mrf.mxu1 }
0x1151 PF: > { %s4008_s19 = sld [smem:[#allocation26_spill]]  ;;  %s2126_s6 = sshll.u32 %s824_s17, 4  ;;  %s2127_s6 = int_to_ptr.vmem [resolvable:$true] %s2126_s6 }
0x1152   : > { %s4009_s8 = sld [smem:[#allocation52_spill]]  ;;  %s2114_s20 = scalar_lea.sflag [#allocation7], %s3528_s16 }
0x1153   : > { %s3023_s28 = scalar_lea.vmem %s2127_s6, 16  ;;  %p4010_p8 = scmp.ne.s32.totalorder %s3970_s4, 0 }
0x1154   : > { %p3024_p9 = scmp.ne.s32.totalorder %s2127_s6, %s3023_s28  ;;  %s3176_s30 = smov [#allocation14]  }
0x1155   : > { %s3027_s5 = sshll.u32 %s3176_s30, 4  ;;  %s3028_s5 = int_to_ptr.vmem [resolvable:$false] %s3027_s5 }
0x1156   : > { %p3025_p0 = pnand %p3024_p9, %p4010_p8  ;;  %s3029_s10 = scalar_lea.vmem %s3028_s5, 32 }
0x1157   : > { %s2456_s27 = sshll.u32 %s4008_s19, 4  ;;  %p3030_p13 = scmp.lt.s32.totalorder %s2127_s6, %s3028_s5 }
0x1158   : > { %s2124_s29 = scalar_lea.hbm %s4009_s8, %s2456_s27  ;;  %p3026_p1 = pneg %p3025_p0 }
0x1159   : > { %p3031_p7 = scmp.lt.s32.totalorder %s3029_s10, %s3023_s28 }
0x115b   : > { %p3032_p2 = por %p3031_p7, %p3030_p13 }
0x115d   : > { %p3033_p5 = pnand %p3032_p2, %p3026_p1 }
0x115f   : > { %3036 = shalt.err (!%p3033_p5)
}
0x1160   : > { %s3037_s21 = scalar_lea.hbm %s2124_s29, 16  ;;  %s3041_s22 = scalar_lea.hbm %s4009_s8, 32 }
0x1161   : > { %p3038_p12 = scmp.ne.s32.totalorder %s2124_s29, %s3037_s21  ;;  %p3042_p10 = scmp.lt.s32.totalorder %s2124_s29, %s4009_s8 }
0x1162   : > { %p3043_p4 = scmp.lt.s32.totalorder %s3041_s22, %s3037_s21 }
0x1163   : > { %p3039_p3 = pnand %p3038_p12, %p4010_p8 }
0x1164   : > { %p3044_p11 = por %p3043_p4, %p3042_p10 }
0x1165   : > { %p3040_p6 = pneg %p3039_p3 }
0x1167   : > { %p3045_p9 = pnand %p3044_p11, %p3040_p6 }
0x1169   : > { %3048 = shalt.err (!%p3045_p9)
}
0x116a   : > { %2670 = dma.vmem_to_hbm [thread:$0]  (%p4010_p8), %s2127_s6, 16, %s2124_s29, %s2114_s20  }
0x116b PF: > { %s4011_s11 = sld [smem:[#allocation23_spill]]  ;;  %p2701_p0 = scmp.ge.s32.totalorder %s3157_s26, 2 }
0x116c   : > { %s4012_s0 = sld [smem:[#allocation33_spill]] }
0x1171   : > { %s2138_s14 = sand.u32 1, %s4011_s11  }
0x1172   : > { %p4013_p1 = scmp.ne.s32.totalorder %s4012_s0, 0  ;;  %s2139_s23 = scalar_lea.sflag [#allocation7], %s2138_s14 }
0x1174   : > { %p2693_p13 = pnand %p2701_p0, %p4013_p1 }
0x1176   : > { %p2694_p7 = pneg %p2693_p13 }
0x1178   : > { %3112 = dma.done.wait (%p2694_p7), %s2139_s23, 16  }
0x1179   : > { %3114 = vsyncadd (%p2694_p7), %s2139_s23, 4294967280  ;;  %s41_s26 = sadd.s32 1, %s3157_s26   ;;  %s4014_s19 = sld [smem:[#allocation21_spill]] }
0x117a   : > { %p38_p2 = scmp.ge.s32.totalorder %s41_s26, 6   ;;  %s4015_s1 = sld [smem:[#allocation22_spill]] }
0x117b   : > { %s4016_s20 = sld [smem:[#allocation31_spill]] }
0x117c   : > { %s4017_s21 = sld [smem:[#allocation24_spill]] }
0x117d   : > { %s4018_s22 = sld [smem:[#allocation25_spill]] }
0x117e   : > { %s4019_s2 = sld [smem:[#allocation32_spill]]  ;;  %40 = sbr.rel (!%p38_p2) target bundleno = 50 (0x32), region = 216 }
0x117f   : > { %s4020_s12 = sld [smem:[#allocation27_spill]] }
0x1180   : > { %s4021_s23 = sld [smem:[#allocation28_spill]] }
0x1181   : > { %s4022_s24 = sld [smem:[#allocation29_spill]] }
0x1182   : > { %s4023_s25 = sld [smem:[#allocation30_spill]] }
0x1183   :  { %2143 = vsyncpa [#allocation6], 1 }
0x1184   :  { %2145 = vsyncpa [#allocation6 + $0x1], 1 }
0x1185   :  { %2146 = vsyncpa [#allocation9], 1 }
0x1186   :  { %2147 = vsyncpa [#allocation7], 1 }
0x1187   :  { %2149 = vsyncpa [#allocation7 + $0x1], 1 }

</bundles_post_ra>
